<compile_context>
chip_gen: v7x
topology: tpu7x:2x2x1
jax: 0.10.0
libtpu: 0.0.40
codegen_flags: <defaults>
</compile_context>

<pallas_src>
import jax
import jax.numpy as jnp
from jax import lax
from jax.experimental import pallas as pl
from jax.experimental.pallas import tpu as pltpu


def _bilstm_kernel(emb2d_ref, mask_ref, h0_ref, c0_ref,
                   wih_cat_ref, b_cat_ref, whh_f_ref, whh_b_ref,
                   out_f_ref, out_b_ref, hf_f_ref, hf_b_ref,
                   xp_s, hf_s, cf_s, hb_s, cb_s):
    T = out_f_ref.shape[0]
    B, H = hf_s.shape
    G = 4 * H

    # ---- Hoisted, time-batched input projection for BOTH directions --------
    # (T*B, E)bf16 @ (E, 8H)bf16 -> (T*B, 8H)f32 ; bias folded in exactly once.
    xp_s[...] = (jnp.dot(emb2d_ref[...], wih_cat_ref[...],
                         preferred_element_type=jnp.float32)
                 + b_cat_ref[...])

    # ---- Init recurrent state (kept in f32) ---------------------------------
    hf_s[...] = h0_ref[0]
    cf_s[...] = c0_ref[0]
    hb_s[...] = h0_ref[1]
    cb_s[...] = c0_ref[1]

    def cell(xrow, h, c, whh_ref):
        # Only the recurrent matmul stays inside the serial chain.
        gates = xrow + jnp.dot(h.astype(jnp.bfloat16), whh_ref[...],
                               preferred_element_type=jnp.float32)
        i_g = jax.nn.sigmoid(gates[:, 0 * H:1 * H])   # lane-aligned (H = 128)
        f_g = jax.nn.sigmoid(gates[:, 1 * H:2 * H])
        g_g = jnp.tanh(gates[:, 2 * H:3 * H])
        o_g = jax.nn.sigmoid(gates[:, 3 * H:4 * H])
        c_new = f_g * c + i_g * g_g
        h_new = o_g * jnp.tanh(c_new)
        return h_new, c_new

    def body(k, carry):
        # ---- forward chain at t = k ----
        tf = k
        off_f = pl.multiple_of(tf * B, B)
        x_f = xp_s[pl.ds(off_f, B), pl.ds(0, G)]
        m_f = jnp.broadcast_to(mask_ref[tf], (B, H)) > 0.0
        h, c = hf_s[...], cf_s[...]
        h_new, c_new = cell(x_f, h, c, whh_f_ref)
        hf_s[...] = jnp.where(m_f, h_new, h)      # packed-sequence gating
        cf_s[...] = jnp.where(m_f, c_new, c)
        out_f_ref[tf] = jnp.where(m_f, h_new, 0.0)  # pad steps -> 0

        # ---- backward chain at t = T-1-k (independent -> overlaps with fwd) ----
        tb = T - 1 - k
        off_b = pl.multiple_of(tb * B, B)
        x_b = xp_s[pl.ds(off_b, B), pl.ds(G, G)]
        m_b = jnp.broadcast_to(mask_ref[tb], (B, H)) > 0.0
        h, c = hb_s[...], cb_s[...]
        h_new, c_new = cell(x_b, h, c, whh_b_ref)
        hb_s[...] = jnp.where(m_b, h_new, h)
        cb_s[...] = jnp.where(m_b, c_new, c)
        out_b_ref[tb] = jnp.where(m_b, h_new, 0.0)
        return carry

    lax.fori_loop(0, T, body, 0)

    hf_f_ref[...] = hf_s[...]
    hf_b_ref[...] = hb_s[...]


def bilstm_pallas(emb_tbe, mask_tb1, h0, c0, params):
    T, B, E = emb_tbe.shape
    H = h0.shape[-1]
    G = 4 * H

    # bf16 MXU inputs; flatten time x batch for the hoisted projection (glue).
    emb2d = emb_tbe.astype(jnp.bfloat16).reshape(T * B, E)

    flops = (2 * (T * B) * E * (2 * G)          # hoisted input projection
             + 2 * (2 * T) * B * H * G          # recurrent h @ W_hh (both dirs)
             + 2 * T * B * G * 4)               # gate elementwise (rough)
    transcendentals = 2 * T * B * (G + H)       # sigmoid/tanh per gate + tanh(c)
    bytes_accessed = (emb2d.size * 2 + mask_tb1.size * 4
                      + 2 * 2 * B * H * 4                       # h0 / c0
                      + (E * 2 * G + 2 * H * G) * 2 + 2 * G * 4  # weights / bias
                      + (2 * T * B * H + 2 * B * H) * 4)         # outputs

    vmem = pl.BlockSpec(memory_space=pltpu.MemorySpace.VMEM)
    return pl.pallas_call(
        _bilstm_kernel,
        out_shape=(
            jax.ShapeDtypeStruct((T, B, H), jnp.float32),   # out_f
            jax.ShapeDtypeStruct((T, B, H), jnp.float32),   # out_b
            jax.ShapeDtypeStruct((B, H), jnp.float32),      # final fwd h
            jax.ShapeDtypeStruct((B, H), jnp.float32),      # final bwd h
        ),
        in_specs=[vmem] * 8,
        out_specs=(vmem, vmem, vmem, vmem),
        scratch_shapes=[
            pltpu.VMEM((T * B, 2 * G), jnp.float32),   # precomputed x-projection
            pltpu.VMEM((B, H), jnp.float32),           # h fwd
            pltpu.VMEM((B, H), jnp.float32),           # c fwd
            pltpu.VMEM((B, H), jnp.float32),           # h bwd
            pltpu.VMEM((B, H), jnp.float32),           # c bwd
        ],
        compiler_params=pltpu.CompilerParams(vmem_limit_bytes=32 * 1024 * 1024),
        cost_estimate=pl.CostEstimate(flops=flops,
                                      transcendentals=transcendentals,
                                      bytes_accessed=bytes_accessed),
    )(emb2d, mask_tb1, h0, c0,
      params['wih_cat_T'], params['b_cat'],
      params['whh_f_T'], params['whh_b_T'])


def rnn_encoder_forward(captions, cap_lens, hidden, params):
    B0, T = captions.shape
    # Embedding lookup; dropout is identity (module is in eval mode). Gather = glue.
    emb = jnp.take(params['emb'], captions, axis=0)                  # (B0, T, E)

    # Pad batch to a multiple of 8 sublanes; padded rows get len 0 (inert).
    B = -(-B0 // 8) * 8
    pad = B - B0
    emb = jnp.pad(emb, ((0, pad), (0, 0), (0, 0)))
    lens = jnp.pad(cap_lens, (0, pad))
    h0 = jnp.pad(hidden[0], ((0, 0), (0, pad), (0, 0)))
    c0 = jnp.pad(hidden[1], ((0, 0), (0, pad), (0, 0)))

    mask = (jnp.arange(T)[None, :] < lens[:, None]).astype(jnp.float32)  # (B, T)
    emb_tbe = jnp.transpose(emb, (1, 0, 2))                          # (T, B, E)
    mask_tb1 = jnp.transpose(mask, (1, 0))[:, :, None]               # (T, B, 1)

    out_f, out_b, hf_f, hf_b = bilstm_pallas(emb_tbe, mask_tb1, h0, c0, params)

    output = jnp.concatenate([out_f, out_b], axis=-1)                # (T, B, 2H)
    output = jnp.transpose(output, (1, 0, 2))[:B0]                   # (B0, T, 2H)
    # TODO(synk): pad_packed_sequence pads to max(cap_lens); here max(cap_lens) == T.
    words_emb = jnp.transpose(output, (0, 2, 1))                     # (B0, 2H, T)
    sent_emb = jnp.concatenate([hf_f, hf_b], axis=-1)[:B0]           # (B0, 2H)
    return words_emb, sent_emb


def init_params(key, ntoken, ninput, H):
    # Deterministic synthetic parameters (shapes from the module's __init__).
    E = ninput
    ks = jax.random.split(key, 9)
    lim = 1.0 / float(H) ** 0.5

    def u(k, shape, l):
        return jax.random.uniform(k, shape, jnp.float32, -l, l)

    emb = u(ks[0], (ntoken, E), 0.1)
    wih_f = u(ks[1], (4 * H, E), lim)
    whh_f = u(ks[2], (4 * H, H), lim)
    bih_f = u(ks[3], (4 * H,), lim)
    bhh_f = u(ks[4], (4 * H,), lim)
    wih_b = u(ks[5], (4 * H, E), lim)
    whh_b = u(ks[6], (4 * H, H), lim)
    bih_b = u(ks[7], (4 * H,), lim)
    bhh_b = u(ks[8], (4 * H,), lim)

    wih_f_T = wih_f.T.astype(jnp.bfloat16)          # (E, 4H) bf16
    wih_b_T = wih_b.T.astype(jnp.bfloat16)
    b_f = (bih_f + bhh_f)[None, :]                  # (1, 4H) f32
    b_b = (bih_b + bhh_b)[None, :]
    return dict(
        emb=emb,
        wih_f_T=wih_f_T, whh_f_T=whh_f.T.astype(jnp.bfloat16), b_f=b_f,
        wih_b_T=wih_b_T, whh_b_T=whh_b.T.astype(jnp.bfloat16), b_b=b_b,
        wih_cat_T=jnp.concatenate([wih_f_T, wih_b_T], axis=1),   # (E, 8H) bf16
        b_cat=jnp.concatenate([b_f, b_b], axis=1),               # (1, 8H) f32
    )


def _lstm_ref(emb, mask, h0, c0, wih_T, whh_T, b, reverse):
    # Pure-JAX reference (same bf16 matmul inputs / f32 accumulate, same masking).
    B, T, E = emb.shape
    H = h0.shape[-1]
    xp = jnp.dot(emb.astype(jnp.bfloat16).reshape(B * T, E), wih_T,
                 preferred_element_type=jnp.float32).reshape(B, T, 4 * H) + b
    h, c = h0, c0
    outs = [None] * T
    order = range(T - 1, -1, -1) if reverse else range(T)
    for t in order:
        m = mask[:, t][:, None]
        gates = xp[:, t, :] + jnp.dot(h.astype(jnp.bfloat16), whh_T,
                                      preferred_element_type=jnp.float32)
        i = jax.nn.sigmoid(gates[:, :H])
        f = jax.nn.sigmoid(gates[:, H:2 * H])
        g = jnp.tanh(gates[:, 2 * H:3 * H])
        o = jax.nn.sigmoid(gates[:, 3 * H:])
        cn = f * c + i * g
        hn = o * jnp.tanh(cn)
        h = jnp.where(m > 0.0, hn, h)
        c = jnp.where(m > 0.0, cn, c)
        outs[t] = jnp.where(m > 0.0, hn, 0.0)
    return jnp.stack(outs, axis=1), h


if __name__ == "__main__":
    # Small but module-consistent config: nhidden=256 (module default), bidirectional
    # -> per-direction H = 128 (lane-aligned); T = 18 (module n_steps); E = 128.
    ntoken, ninput, nhidden, num_dir = 1000, 128, 256, 2
    H = nhidden // num_dir
    B, T = 6, 18

    key = jax.random.PRNGKey(0)
    kp, kc = jax.random.split(key)
    params = init_params(kp, ntoken, ninput, H)

    captions = jax.random.randint(kc, (B, T), 1, ntoken, dtype=jnp.int32)
    cap_lens = jnp.array([18, 11, 7, 18, 3, 14], dtype=jnp.int32)  # max == T, unsorted
    # init_hidden(bsz): zeros of shape (nlayers * num_directions, B, H)
    h0 = jnp.zeros((num_dir, B, H), jnp.float32)
    c0 = jnp.zeros((num_dir, B, H), jnp.float32)

    words_emb, sent_emb = jax.jit(rnn_encoder_forward)(captions, cap_lens, (h0, c0), params)
    jax.block_until_ready((words_emb, sent_emb))
    assert words_emb.shape == (B, nhidden, T)
    assert sent_emb.shape == (B, nhidden)

    # Correctness check against a pure-JAX reference.
    emb_full = jnp.take(params['emb'], captions, axis=0)
    mask_full = (jnp.arange(T)[None, :] < cap_lens[:, None]).astype(jnp.float32)
    of, hff = _lstm_ref(emb_full, mask_full, h0[0], c0[0],
                        params['wih_f_T'], params['whh_f_T'], params['b_f'], False)
    ob, hfb = _lstm_ref(emb_full, mask_full, h0[1], c0[1],
                        params['wih_b_T'], params['whh_b_T'], params['b_b'], True)
    we_ref = jnp.transpose(jnp.concatenate([of, ob], axis=-1), (0, 2, 1))
    se_ref = jnp.concatenate([hff, hfb], axis=-1)
    assert jnp.allclose(words_emb, we_ref, atol=1e-2, rtol=0), "words_emb mismatch"
    assert jnp.allclose(sent_emb, se_ref, atol=1e-2, rtol=0), "sent_emb mismatch"

    print("KERNEL_OK")
</pallas_src>

<mosaic_0001>
module attributes {stable_mosaic.version = 11 : i64} {
  func.func @_bilstm_kernel(%arg0: memref<144x128xbf16, #tpu.memory_space<vmem>>, %arg1: memref<18x8x1xf32, #tpu.memory_space<vmem>>, %arg2: memref<2x8x128xf32, #tpu.memory_space<vmem>>, %arg3: memref<2x8x128xf32, #tpu.memory_space<vmem>>, %arg4: memref<128x1024xbf16, #tpu.memory_space<vmem>>, %arg5: memref<1x1024xf32, #tpu.memory_space<vmem>>, %arg6: memref<128x512xbf16, #tpu.memory_space<vmem>>, %arg7: memref<128x512xbf16, #tpu.memory_space<vmem>>, %arg8: memref<18x8x128xf32, #tpu.memory_space<vmem>>, %arg9: memref<18x8x128xf32, #tpu.memory_space<vmem>>, %arg10: memref<8x128xf32, #tpu.memory_space<vmem>>, %arg11: memref<8x128xf32, #tpu.memory_space<vmem>>, %arg12: memref<144x1024xf32, #tpu.memory_space<vmem>>, %arg13: memref<8x128xf32, #tpu.memory_space<vmem>>, %arg14: memref<8x128xf32, #tpu.memory_space<vmem>>, %arg15: memref<8x128xf32, #tpu.memory_space<vmem>>, %arg16: memref<8x128xf32, #tpu.memory_space<vmem>>) attributes {dimension_semantics = [], scalar_prefetch = 0 : i64, scratch_operands = 5 : i64, tpu.core_type = #tpu.core_type<tc>} {
    %c0 = arith.constant 0 : index
    %c0_0 = arith.constant 0 : index
    %0 = vector.load %arg0[%c0, %c0_0] : memref<144x128xbf16, #tpu.memory_space<vmem>>, vector<144x128xbf16>
    %c0_1 = arith.constant 0 : index
    %c0_2 = arith.constant 0 : index
    %1 = vector.load %arg4[%c0_1, %c0_2] : memref<128x1024xbf16, #tpu.memory_space<vmem>>, vector<128x1024xbf16>
    %cst = arith.constant dense<0.000000e+00> : vector<144x1024xf32>
    %2 = tpu.matmul %0, %1, %cst {dimension_numbers = #tpu.dot_dimension_numbers<[1], [0], [0], [1], [0, 0, 1, 1], [], []>} : vector<144x128xbf16>, vector<128x1024xbf16>, vector<144x1024xf32> -> vector<144x1024xf32>
    %c0_3 = arith.constant 0 : index
    %c0_4 = arith.constant 0 : index
    %3 = vector.load %arg5[%c0_3, %c0_4] : memref<1x1024xf32, #tpu.memory_space<vmem>>, vector<1x1024xf32>
    %4 = vector.broadcast %3 : vector<1x1024xf32> to vector<144x1024xf32>
    %5 = arith.addf %2, %4 : vector<144x1024xf32>
    %c0_5 = arith.constant 0 : index
    %c0_6 = arith.constant 0 : index
    %6 = vector.load %arg12[%c0_5, %c0_6] : memref<144x1024xf32, #tpu.memory_space<vmem>>, vector<144x1024xf32>
    tpu.vector_store %arg12[%c0_5, %c0_6], %5 {strides = array<i32>} : memref<144x1024xf32, #tpu.memory_space<vmem>>, vector<144x1024xf32>,
    %c0_7 = arith.constant 0 : index
    %c0_8 = arith.constant 0 : index
    %c0_9 = arith.constant 0 : index
    %7 = vector.load %arg2[%c0_7, %c0_8, %c0_9] : memref<2x8x128xf32, #tpu.memory_space<vmem>>, vector<1x8x128xf32>
    %8 = vector.shape_cast %7 : vector<1x8x128xf32> to vector<8x128xf32>
    %c0_10 = arith.constant 0 : index
    %c0_11 = arith.constant 0 : index
    %9 = vector.load %arg13[%c0_10, %c0_11] : memref<8x128xf32, #tpu.memory_space<vmem>>, vector<8x128xf32>
    tpu.vector_store %arg13[%c0_10, %c0_11], %8 {strides = array<i32>} : memref<8x128xf32, #tpu.memory_space<vmem>>, vector<8x128xf32>,
    %c0_12 = arith.constant 0 : index
    %c0_13 = arith.constant 0 : index
    %c0_14 = arith.constant 0 : index
    %10 = vector.load %arg3[%c0_12, %c0_13, %c0_14] : memref<2x8x128xf32, #tpu.memory_space<vmem>>, vector<1x8x128xf32>
    %11 = vector.shape_cast %10 : vector<1x8x128xf32> to vector<8x128xf32>
    %c0_15 = arith.constant 0 : index
    %c0_16 = arith.constant 0 : index
    %12 = vector.load %arg14[%c0_15, %c0_16] : memref<8x128xf32, #tpu.memory_space<vmem>>, vector<8x128xf32>
    tpu.vector_store %arg14[%c0_15, %c0_16], %11 {strides = array<i32>} : memref<8x128xf32, #tpu.memory_space<vmem>>, vector<8x128xf32>,
    %c1 = arith.constant 1 : index
    %c0_17 = arith.constant 0 : index
    %c0_18 = arith.constant 0 : index
    %13 = vector.load %arg2[%c1, %c0_17, %c0_18] : memref<2x8x128xf32, #tpu.memory_space<vmem>>, vector<1x8x128xf32>
    %14 = vector.shape_cast %13 : vector<1x8x128xf32> to vector<8x128xf32>
    %c0_19 = arith.constant 0 : index
    %c0_20 = arith.constant 0 : index
    %15 = vector.load %arg15[%c0_19, %c0_20] : memref<8x128xf32, #tpu.memory_space<vmem>>, vector<8x128xf32>
    tpu.vector_store %arg15[%c0_19, %c0_20], %14 {strides = array<i32>} : memref<8x128xf32, #tpu.memory_space<vmem>>, vector<8x128xf32>,
    %c1_21 = arith.constant 1 : index
    %c0_22 = arith.constant 0 : index
    %c0_23 = arith.constant 0 : index
    %16 = vector.load %arg3[%c1_21, %c0_22, %c0_23] : memref<2x8x128xf32, #tpu.memory_space<vmem>>, vector<1x8x128xf32>
    %17 = vector.shape_cast %16 : vector<1x8x128xf32> to vector<8x128xf32>
    %c0_24 = arith.constant 0 : index
    %c0_25 = arith.constant 0 : index
    %18 = vector.load %arg16[%c0_24, %c0_25] : memref<8x128xf32, #tpu.memory_space<vmem>>, vector<8x128xf32>
    tpu.vector_store %arg16[%c0_24, %c0_25], %17 {strides = array<i32>} : memref<8x128xf32, #tpu.memory_space<vmem>>, vector<8x128xf32>,
    %c0_i32 = arith.constant 0 : i32
    %c18_i32 = arith.constant 18 : i32
    %19 = arith.addi %c0_i32, %c18_i32 : i32
    %c1_i32 = arith.constant 1 : i32
    scf.for %arg17 = %c0_i32 to %19 step %c1_i32  : i32 {
      %c8_i32 = arith.constant 8 : i32
      %24 = arith.muli %arg17, %c8_i32 : i32
      %25 = tpu.assume_multiple %24, 8 : i32
      %26 = arith.index_cast %25 : i32 to index
      %c0_35 = arith.constant 0 : index
      %27 = vector.load %arg12[%26, %c0_35] : memref<144x1024xf32, #tpu.memory_space<vmem>>, vector<8x512xf32>
      %28 = arith.index_cast %arg17 : i32 to index
      %c0_36 = arith.constant 0 : index
      %c0_37 = arith.constant 0 : index
      %29 = vector.load %arg1[%28, %c0_36, %c0_37] : memref<18x8x1xf32, #tpu.memory_space<vmem>>, vector<1x8x1xf32>
      %30 = vector.shape_cast %29 : vector<1x8x1xf32> to vector<8x1xf32>
      %31 = vector.shape_cast %30 : vector<8x1xf32> to vector<8x1xf32>
      %32 = vector.broadcast %31 : vector<8x1xf32> to vector<8x128xf32>
      %cst_38 = arith.constant 0.000000e+00 : f32
      %33 = vector.broadcast %cst_38 : f32 to vector<8x128xf32>
      %34 = arith.cmpf ogt, %32, %33 : vector<8x128xf32>
      %c0_39 = arith.constant 0 : index
      %c0_40 = arith.constant 0 : index
      %35 = vector.load %arg13[%c0_39, %c0_40] : memref<8x128xf32, #tpu.memory_space<vmem>>, vector<8x128xf32>
      %c0_41 = arith.constant 0 : index
      %c0_42 = arith.constant 0 : index
      %36 = vector.load %arg14[%c0_41, %c0_42] : memref<8x128xf32, #tpu.memory_space<vmem>>, vector<8x128xf32>
      %37 = arith.truncf %35 : vector<8x128xf32> to vector<8x128xbf16>
      %c0_43 = arith.constant 0 : index
      %c0_44 = arith.constant 0 : index
      %38 = vector.load %arg6[%c0_43, %c0_44] : memref<128x512xbf16, #tpu.memory_space<vmem>>, vector<128x512xbf16>
      %cst_45 = arith.constant dense<0.000000e+00> : vector<8x512xf32>
      %39 = tpu.matmul %37, %38, %cst_45 {dimension_numbers = #tpu.dot_dimension_numbers<[1], [0], [0], [1], [0, 0, 1, 1], [], []>} : vector<8x128xbf16>, vector<128x512xbf16>, vector<8x512xf32> -> vector<8x512xf32>
      %40 = arith.addf %27, %39 : vector<8x512xf32>
      %41 = vector.extract_strided_slice %40 {offsets = [0, 0], sizes = [8, 128], strides = [1, 1]} : vector<8x512xf32> to vector<8x128xf32>
      %42 = arith.negf %41 : vector<8x128xf32>
      %43 = math.exp %42 : vector<8x128xf32>
      %cst_46 = arith.constant 1.000000e+00 : f32
      %44 = vector.broadcast %cst_46 : f32 to vector<8x128xf32>
      %45 = arith.addf %44, %43 : vector<8x128xf32>
      %46 = arith.divf %44, %45 : vector<8x128xf32>
      %47 = vector.extract_strided_slice %40 {offsets = [0, 128], sizes = [8, 128], strides = [1, 1]} : vector<8x512xf32> to vector<8x128xf32>
      %48 = arith.negf %47 : vector<8x128xf32>
      %49 = math.exp %48 : vector<8x128xf32>
      %cst_47 = arith.constant 1.000000e+00 : f32
      %50 = vector.broadcast %cst_47 : f32 to vector<8x128xf32>
      %51 = arith.addf %50, %49 : vector<8x128xf32>
      %52 = arith.divf %50, %51 : vector<8x128xf32>
      %53 = vector.extract_strided_slice %40 {offsets = [0, 256], sizes = [8, 128], strides = [1, 1]} : vector<8x512xf32> to vector<8x128xf32>
      %54 = math.tanh %53 : vector<8x128xf32>
      %55 = vector.extract_strided_slice %40 {offsets = [0, 384], sizes = [8, 128], strides = [1, 1]} : vector<8x512xf32> to vector<8x128xf32>
      %56 = arith.negf %55 : vector<8x128xf32>
      %57 = math.exp %56 : vector<8x128xf32>
      %cst_48 = arith.constant 1.000000e+00 : f32
      %58 = vector.broadcast %cst_48 : f32 to vector<8x128xf32>
      %59 = arith.addf %58, %57 : vector<8x128xf32>
      %60 = arith.divf %58, %59 : vector<8x128xf32>
      %61 = arith.mulf %52, %36 : vector<8x128xf32>
      %62 = arith.mulf %46, %54 : vector<8x128xf32>
      %63 = arith.addf %61, %62 : vector<8x128xf32>
      %64 = math.tanh %63 : vector<8x128xf32>
      %65 = arith.mulf %60, %64 : vector<8x128xf32>
      %66 = arith.select %34, %65, %35 : vector<8x128xi1>, vector<8x128xf32>
      %c0_49 = arith.constant 0 : index
      %c0_50 = arith.constant 0 : index
      %67 = vector.load %arg13[%c0_49, %c0_50] : memref<8x128xf32, #tpu.memory_space<vmem>>, vector<8x128xf32>
      tpu.vector_store %arg13[%c0_49, %c0_50], %66 {strides = array<i32>} : memref<8x128xf32, #tpu.memory_space<vmem>>, vector<8x128xf32>,
      %68 = arith.select %34, %63, %36 : vector<8x128xi1>, vector<8x128xf32>
      %c0_51 = arith.constant 0 : index
      %c0_52 = arith.constant 0 : index
      %69 = vector.load %arg14[%c0_51, %c0_52] : memref<8x128xf32, #tpu.memory_space<vmem>>, vector<8x128xf32>
      tpu.vector_store %arg14[%c0_51, %c0_52], %68 {strides = array<i32>} : memref<8x128xf32, #tpu.memory_space<vmem>>, vector<8x128xf32>,
      %cst_53 = arith.constant 0.000000e+00 : f32
      %70 = vector.broadcast %cst_53 : f32 to vector<8x128xf32>
      %71 = arith.select %34, %65, %70 : vector<8x128xi1>, vector<8x128xf32>
      %72 = arith.index_cast %arg17 : i32 to index
      %c0_54 = arith.constant 0 : index
      %c0_55 = arith.constant 0 : index
      %73 = vector.load %arg8[%72, %c0_54, %c0_55] : memref<18x8x128xf32, #tpu.memory_space<vmem>>, vector<1x8x128xf32>
      %74 = vector.shape_cast %73 : vector<1x8x128xf32> to vector<8x128xf32>
      %75 = vector.shape_cast %71 : vector<8x128xf32> to vector<1x8x128xf32>
      tpu.vector_store %arg8[%72, %c0_54, %c0_55], %75 {strides = array<i32>} : memref<18x8x128xf32, #tpu.memory_space<vmem>>, vector<1x8x128xf32>,
      %c17_i32 = arith.constant 17 : i32
      %76 = arith.subi %c17_i32, %arg17 : i32
      %c8_i32_56 = arith.constant 8 : i32
      %77 = arith.muli %76, %c8_i32_56 : i32
      %78 = tpu.assume_multiple %77, 8 : i32
      %79 = arith.index_cast %78 : i32 to index
      %c512 = arith.constant 512 : index
      %80 = vector.load %arg12[%79, %c512] : memref<144x1024xf32, #tpu.memory_space<vmem>>, vector<8x512xf32>
      %81 = arith.index_cast %76 : i32 to index
      %c0_57 = arith.constant 0 : index
      %c0_58 = arith.constant 0 : index
      %82 = vector.load %arg1[%81, %c0_57, %c0_58] : memref<18x8x1xf32, #tpu.memory_space<vmem>>, vector<1x8x1xf32>
      %83 = vector.shape_cast %82 : vector<1x8x1xf32> to vector<8x1xf32>
      %84 = vector.shape_cast %83 : vector<8x1xf32> to vector<8x1xf32>
      %85 = vector.broadcast %84 : vector<8x1xf32> to vector<8x128xf32>
      %cst_59 = arith.constant 0.000000e+00 : f32
      %86 = vector.broadcast %cst_59 : f32 to vector<8x128xf32>
      %87 = arith.cmpf ogt, %85, %86 : vector<8x128xf32>
      %c0_60 = arith.constant 0 : index
      %c0_61 = arith.constant 0 : index
      %88 = vector.load %arg15[%c0_60, %c0_61] : memref<8x128xf32, #tpu.memory_space<vmem>>, vector<8x128xf32>
      %c0_62 = arith.constant 0 : index
      %c0_63 = arith.constant 0 : index
      %89 = vector.load %arg16[%c0_62, %c0_63] : memref<8x128xf32, #tpu.memory_space<vmem>>, vector<8x128xf32>
      %90 = arith.truncf %88 : vector<8x128xf32> to vector<8x128xbf16>
      %c0_64 = arith.constant 0 : index
      %c0_65 = arith.constant 0 : index
      %91 = vector.load %arg7[%c0_64, %c0_65] : memref<128x512xbf16, #tpu.memory_space<vmem>>, vector<128x512xbf16>
      %cst_66 = arith.constant dense<0.000000e+00> : vector<8x512xf32>
      %92 = tpu.matmul %90, %91, %cst_66 {dimension_numbers = #tpu.dot_dimension_numbers<[1], [0], [0], [1], [0, 0, 1, 1], [], []>} : vector<8x128xbf16>, vector<128x512xbf16>, vector<8x512xf32> -> vector<8x512xf32>
      %93 = arith.addf %80, %92 : vector<8x512xf32>
      %94 = vector.extract_strided_slice %93 {offsets = [0, 0], sizes = [8, 128], strides = [1, 1]} : vector<8x512xf32> to vector<8x128xf32>
      %95 = arith.negf %94 : vector<8x128xf32>
      %96 = math.exp %95 : vector<8x128xf32>
      %cst_67 = arith.constant 1.000000e+00 : f32
      %97 = vector.broadcast %cst_67 : f32 to vector<8x128xf32>
      %98 = arith.addf %97, %96 : vector<8x128xf32>
      %99 = arith.divf %97, %98 : vector<8x128xf32>
      %100 = vector.extract_strided_slice %93 {offsets = [0, 128], sizes = [8, 128], strides = [1, 1]} : vector<8x512xf32> to vector<8x128xf32>
      %101 = arith.negf %100 : vector<8x128xf32>
      %102 = math.exp %101 : vector<8x128xf32>
      %cst_68 = arith.constant 1.000000e+00 : f32
      %103 = vector.broadcast %cst_68 : f32 to vector<8x128xf32>
      %104 = arith.addf %103, %102 : vector<8x128xf32>
      %105 = arith.divf %103, %104 : vector<8x128xf32>
      %106 = vector.extract_strided_slice %93 {offsets = [0, 256], sizes = [8, 128], strides = [1, 1]} : vector<8x512xf32> to vector<8x128xf32>
      %107 = math.tanh %106 : vector<8x128xf32>
      %108 = vector.extract_strided_slice %93 {offsets = [0, 384], sizes = [8, 128], strides = [1, 1]} : vector<8x512xf32> to vector<8x128xf32>
      %109 = arith.negf %108 : vector<8x128xf32>
      %110 = math.exp %109 : vector<8x128xf32>
      %cst_69 = arith.constant 1.000000e+00 : f32
      %111 = vector.broadcast %cst_69 : f32 to vector<8x128xf32>
      %112 = arith.addf %111, %110 : vector<8x128xf32>
      %113 = arith.divf %111, %112 : vector<8x128xf32>
      %114 = arith.mulf %105, %89 : vector<8x128xf32>
      %115 = arith.mulf %99, %107 : vector<8x128xf32>
      %116 = arith.addf %114, %115 : vector<8x128xf32>
      %117 = math.tanh %116 : vector<8x128xf32>
      %118 = arith.mulf %113, %117 : vector<8x128xf32>
      %119 = arith.select %87, %118, %88 : vector<8x128xi1>, vector<8x128xf32>
      %c0_70 = arith.constant 0 : index
      %c0_71 = arith.constant 0 : index
      %120 = vector.load %arg15[%c0_70, %c0_71] : memref<8x128xf32, #tpu.memory_space<vmem>>, vector<8x128xf32>
      tpu.vector_store %arg15[%c0_70, %c0_71], %119 {strides = array<i32>} : memref<8x128xf32, #tpu.memory_space<vmem>>, vector<8x128xf32>,
      %121 = arith.select %87, %116, %89 : vector<8x128xi1>, vector<8x128xf32>
      %c0_72 = arith.constant 0 : index
      %c0_73 = arith.constant 0 : index
      %122 = vector.load %arg16[%c0_72, %c0_73] : memref<8x128xf32, #tpu.memory_space<vmem>>, vector<8x128xf32>
      tpu.vector_store %arg16[%c0_72, %c0_73], %121 {strides = array<i32>} : memref<8x128xf32, #tpu.memory_space<vmem>>, vector<8x128xf32>,
      %cst_74 = arith.constant 0.000000e+00 : f32
      %123 = vector.broadcast %cst_74 : f32 to vector<8x128xf32>
      %124 = arith.select %87, %118, %123 : vector<8x128xi1>, vector<8x128xf32>
      %125 = arith.index_cast %76 : i32 to index
      %c0_75 = arith.constant 0 : index
      %c0_76 = arith.constant 0 : index
      %126 = vector.load %arg9[%125, %c0_75, %c0_76] : memref<18x8x128xf32, #tpu.memory_space<vmem>>, vector<1x8x128xf32>
      %127 = vector.shape_cast %126 : vector<1x8x128xf32> to vector<8x128xf32>
      %128 = vector.shape_cast %124 : vector<8x128xf32> to vector<1x8x128xf32>
      tpu.vector_store %arg9[%125, %c0_75, %c0_76], %128 {strides = array<i32>} : memref<18x8x128xf32, #tpu.memory_space<vmem>>, vector<1x8x128xf32>,
    }
    %c18_i32_26 = arith.constant 18 : i32
    %c0_27 = arith.constant 0 : index
    %c0_28 = arith.constant 0 : index
    %20 = vector.load %arg13[%c0_27, %c0_28] : memref<8x128xf32, #tpu.memory_space<vmem>>, vector<8x128xf32>
    %c0_29 = arith.constant 0 : index
    %c0_30 = arith.constant 0 : index
    %21 = vector.load %arg10[%c0_29, %c0_30] : memref<8x128xf32, #tpu.memory_space<vmem>>, vector<8x128xf32>
    tpu.vector_store %arg10[%c0_29, %c0_30], %20 {strides = array<i32>} : memref<8x128xf32, #tpu.memory_space<vmem>>, vector<8x128xf32>,
    %c0_31 = arith.constant 0 : index
    %c0_32 = arith.constant 0 : index
    %22 = vector.load %arg15[%c0_31, %c0_32] : memref<8x128xf32, #tpu.memory_space<vmem>>, vector<8x128xf32>
    %c0_33 = arith.constant 0 : index
    %c0_34 = arith.constant 0 : index
    %23 = vector.load %arg11[%c0_33, %c0_34] : memref<8x128xf32, #tpu.memory_space<vmem>>, vector<8x128xf32>
    tpu.vector_store %arg11[%c0_33, %c0_34], %22 {strides = array<i32>} : memref<8x128xf32, #tpu.memory_space<vmem>>, vector<8x128xf32>,
    return
  }
}

</mosaic_0001>

<bundles_post_ra>
// kernel: rnn_encoder_forward.1
= control target key start
LH: loop header
LB: loop body
LE: loop exit
PB: predicated region body
PF: predicated region fallthrough
CT: control target
= control target key end

     0   :  { %v2191_v3 = vmov 0   ;;  %s2975_s1 = inlined_call_operand.vmem [shape: f32[18,8,1], index: 1, kind: input, shape index: {}]   ;;  %s2976_s4 = inlined_call_operand.vmem [shape: bf16[128,1024], index: 4, kind: input, shape index: {}]   ;;  %s2977_s6 = inlined_call_operand.vmem [shape: bf16[128,512], index: 6, kind: input, shape index: {}]   ;;  %s2978_s7 = inlined_call_operand.vmem [shape: bf16[128,512], index: 7, kind: input, shape index: {}]   ;;  %s2979_s8 = inlined_call_operand.vmem [shape: f32[18,8,128], index: 8, kind: output, shape index: {0}]   ;;  %s2980_s9 = inlined_call_operand.vmem [shape: f32[18,8,128], index: 9, kind: output, shape index: {1}]   ;;  %s2981_s10 = inlined_call_operand.vmem [shape: f32[8,128], index: 10, kind: output, shape index: {2}]   ;;  %s2982_s11 = inlined_call_operand.vmem [shape: f32[8,128], index: 11, kind: output, shape index: {3}]   ;;  %s2983_s0 = inlined_call_operand.vmem [shape: bf16[144,128], index: 0, kind: input, shape index: {}]   ;;  %s2984_s5 = inlined_call_operand.vmem [shape: f32[1,1024], index: 5, kind: input, shape index: {}]   ;;  %s2985_s2 = inlined_call_operand.vmem [shape: f32[2,8,128], index: 2, kind: input, shape index: {}]   ;;  %s2986_s3 = inlined_call_operand.vmem [shape: f32[2,8,128], index: 3, kind: input, shape index: {}]  }
   0x1   :  { %v52_v0 = vld [vmem:[%s2976_s4] sm:$0xff]  ;;  %v53_v2 = vld [vmem:[%s2976_s4 + $0x8] sm:$0xff]  ;;  %564 = vmatprep.mubr.bf16.mxu0 %v2191_v3  ;;  %687 = vmatprep.mubr.bf16.mxu1 %v2191_v3  ;;  %v54_v63 = vld [vmem:[%s2976_s4 + $0x10] sm:$0xff] }
   0x2   :  { %v56_v1 = vld [vmem:[%s2976_s4 + $0x20] sm:$0xff]  ;;  %v57_v5 = vld [vmem:[%s2976_s4 + $0x28] sm:$0xff] }
   0x3   :  { %v1892_v4 = vcombine.high %v52_v0, %v56_v1  ;;  %v1891_v6 = vcombine.low %v52_v0, %v56_v1  ;;  %v60_v7 = vld [vmem:[%s2976_s4 + $0x40] sm:$0xff]  ;;  %v1894_v9 = vcombine.high %v53_v2, %v57_v5  ;;  %v1893_v10 = vcombine.low %v53_v2, %v57_v5  ;;  %v61_v12 = vld [vmem:[%s2976_s4 + $0x48] sm:$0xff]  ;;  %v58_v0 = vld [vmem:[%s2976_s4 + $0x30] sm:$0xff] }
   0x4   :  { %v64_v8 = vld [vmem:[%s2976_s4 + $0x60] sm:$0xff]  ;;  %v65_v13 = vld [vmem:[%s2976_s4 + $0x68] sm:$0xff]  ;;  %v55_v1 = vld [vmem:[%s2976_s4 + $0x18] sm:$0xff] }
   0x5   :  { %v1900_v11 = vcombine.high %v60_v7, %v64_v8  ;;  %v68_v14 = vld [vmem:[%s2976_s4 + $0x80] sm:$0xff]  ;;  %532 = vmatprep.subr.bf16.mxu0 %v1892_v4  ;;  %v1902_v15 = vcombine.high %v61_v12, %v65_v13  ;;  %v69_v17 = vld [vmem:[%s2976_s4 + $0x88] sm:$0xff]  ;;  %655 = vmatprep.subr.bf16.mxu1 %v1894_v9  ;;  %v1899_v19 = vcombine.low %v60_v7, %v64_v8  ;;  %v59_v2 = vld [vmem:[%s2976_s4 + $0x38] sm:$0xff] }
   0x6   :  { %v72_v16 = vld [vmem:[%s2976_s4 + $0xa0] sm:$0xff]  ;;  %v73_v18 = vld [vmem:[%s2976_s4 + $0xa8] sm:$0xff]  ;;  %533 = vmatpush1.bf16.msra.mxu0 %v1891_v6  ;;  %656 = vmatpush1.bf16.msra.mxu1 %v1893_v10  ;;  %v1901_v20 = vcombine.low %v61_v12, %v65_v13  ;;  %v1896_v6 = vcombine.high %v54_v63, %v58_v0  ;;  %v1898_v7 = vcombine.high %v55_v1, %v59_v2  ;;  %v62_v9 = vld [vmem:[%s2976_s4 + $0x50] sm:$0xff] }
   0x7   :  { %534 = vmatprep.subr.bf16.mxu0 %v1900_v11  ;;  %v1908_v21 = vcombine.high %v68_v14, %v72_v16  ;;  %657 = vmatprep.subr.bf16.mxu1 %v1902_v15  ;;  %v1910_v22 = vcombine.high %v69_v17, %v73_v18  ;;  %v76_v23 = vld [vmem:[%s2976_s4 + $0xc0] sm:$0xff]  ;;  %v77_v25 = vld [vmem:[%s2976_s4 + $0xc8] sm:$0xff]  ;;  %v1907_v27 = vcombine.low %v68_v14, %v72_v16  ;;  %v66_v10 = vld [vmem:[%s2976_s4 + $0x70] sm:$0xff] }
   0x8   :  { %v80_v24 = vld [vmem:[%s2976_s4 + $0xe0] sm:$0xff]  ;;  %v81_v26 = vld [vmem:[%s2976_s4 + $0xe8] sm:$0xff]  ;;  %v1909_v28 = vcombine.low %v69_v17, %v73_v18  ;;  %v1895_v11 = vcombine.low %v54_v63, %v58_v0  ;;  %v63_v12 = vld [vmem:[%s2976_s4 + $0x58] sm:$0xff]  ;;  %v1897_v14 = vcombine.low %v55_v1, %v59_v2  ;;  %v1904_v15 = vcombine.high %v62_v9, %v66_v10 }
   0x9   :  { %v1916_v29 = vcombine.high %v76_v23, %v80_v24  ;;  %v1918_v30 = vcombine.high %v77_v25, %v81_v26  ;;  %v84_v31 = vld [vmem:[%s2976_s4 + $0x100] sm:$0xff]  ;;  %v85_v33 = vld [vmem:[%s2976_s4 + $0x108] sm:$0xff]  ;;  %v1915_v35 = vcombine.low %v76_v23, %v80_v24  ;;  %v1917_v36 = vcombine.low %v77_v25, %v81_v26  ;;  %v67_v13 = vld [vmem:[%s2976_s4 + $0x78] sm:$0xff] }
   0xa   :  { %535 = vmatpush1.bf16.msra.mxu0 %v1899_v19  ;;  %658 = vmatpush1.bf16.msra.mxu1 %v1901_v20  ;;  %v88_v32 = vld [vmem:[%s2976_s4 + $0x120] sm:$0xff]  ;;  %v89_v34 = vld [vmem:[%s2976_s4 + $0x128] sm:$0xff]  ;;  %v70_v16 = vld [vmem:[%s2976_s4 + $0x90] sm:$0xff]  ;;  %v1906_v18 = vcombine.high %v63_v12, %v67_v13 }
   0xb   :  { %536 = vmatprep.subr.bf16.mxu0 %v1908_v21  ;;  %659 = vmatprep.subr.bf16.mxu1 %v1910_v22  ;;  %v1924_v37 = vcombine.high %v84_v31, %v88_v32  ;;  %v1926_v38 = vcombine.high %v85_v33, %v89_v34  ;;  %v92_v39 = vld [vmem:[%s2976_s4 + $0x140] sm:$0xff]  ;;  %v93_v41 = vld [vmem:[%s2976_s4 + $0x148] sm:$0xff]  ;;  %v1923_v43 = vcombine.low %v84_v31, %v88_v32  ;;  %v74_v17 = vld [vmem:[%s2976_s4 + $0xb0] sm:$0xff] }
   0xc   :  { %v96_v40 = vld [vmem:[%s2976_s4 + $0x160] sm:$0xff]  ;;  %v97_v42 = vld [vmem:[%s2976_s4 + $0x168] sm:$0xff]  ;;  %v1925_v44 = vcombine.low %v85_v33, %v89_v34  ;;  %v71_v19 = vld [vmem:[%s2976_s4 + $0x98] sm:$0xff]  ;;  %v1903_v21 = vcombine.low %v62_v9, %v66_v10  ;;  %v1905_v22 = vcombine.low %v63_v12, %v67_v13  ;;  %v1912_v23 = vcombine.high %v70_v16, %v74_v17 }
   0xd   :  { %v1932_v45 = vcombine.high %v92_v39, %v96_v40  ;;  %v1934_v46 = vcombine.high %v93_v41, %v97_v42  ;;  %v100_v47 = vld [vmem:[%s2976_s4 + $0x180] sm:$0xff]  ;;  %v101_v49 = vld [vmem:[%s2976_s4 + $0x188] sm:$0xff]  ;;  %v1931_v51 = vcombine.low %v92_v39, %v96_v40  ;;  %v1933_v52 = vcombine.low %v93_v41, %v97_v42  ;;  %v75_v20 = vld [vmem:[%s2976_s4 + $0xb8] sm:$0xff] }
   0xe   :  { %537 = vmatpush1.bf16.msra.mxu0 %v1907_v27  ;;  %660 = vmatpush1.bf16.msra.mxu1 %v1909_v28  ;;  %v104_v48 = vld [vmem:[%s2976_s4 + $0x1a0] sm:$0xff]  ;;  %v105_v50 = vld [vmem:[%s2976_s4 + $0x1a8] sm:$0xff]  ;;  %v1914_v24 = vcombine.high %v71_v19, %v75_v20  ;;  %v78_v26 = vld [vmem:[%s2976_s4 + $0xd0] sm:$0xff]  ;;  %v1913_v31 = vcombine.low %v71_v19, %v75_v20 }
   0xf   :  { %538 = vmatprep.subr.bf16.mxu0 %v1916_v29  ;;  %661 = vmatprep.subr.bf16.mxu1 %v1918_v30  ;;  %v1940_v53 = vcombine.high %v100_v47, %v104_v48  ;;  %v108_v54 = vld [vmem:[%s2976_s4 + $0x1c0] sm:$0xff]  ;;  %v1942_v55 = vcombine.high %v101_v49, %v105_v50  ;;  %v109_v57 = vld [vmem:[%s2976_s4 + $0x1c8] sm:$0xff]  ;;  %v1939_v59 = vcombine.low %v100_v47, %v104_v48  ;;  %v82_v27 = vld [vmem:[%s2976_s4 + $0xf0] sm:$0xff] }
  0x10   :  { %v112_v56 = vld [vmem:[%s2976_s4 + $0x1e0] sm:$0xff]  ;;  %v113_v58 = vld [vmem:[%s2976_s4 + $0x1e8] sm:$0xff]  ;;  %v1941_v60 = vcombine.low %v101_v49, %v105_v50  ;;  %v79_v28 = vld [vmem:[%s2976_s4 + $0xd8] sm:$0xff]  ;;  %v1911_v30 = vcombine.low %v70_v16, %v74_v17  ;;  %v1920_v32 = vcombine.high %v78_v26, %v82_v27 }
  0x11   :  { %v1948_v61 = vcombine.high %v108_v54, %v112_v56  ;;  %v1950_v62 = vcombine.high %v109_v57, %v113_v58  ;;  %v1947_v4 = vcombine.low %v108_v54, %v112_v56  ;;  %v1949_v5 = vcombine.low %v109_v57, %v113_v58  ;;  %v2366_v8 = vld [vmem:[%s2983_s0] sm:$0xff]   ;;  %v2399_v25 = vld [vmem:[%s2983_s0 + $0x8] sm:$0xff]   ;;  %v83_v29 = vld [vmem:[%s2976_s4 + $0xf8] sm:$0xff] }
  0x12   :  { %539 = vmatpush1.bf16.msra.mxu0 %v1915_v35  ;;  %662 = vmatpush1.bf16.msra.mxu1 %v1917_v36  ;;  %v1922_v33 = vcombine.high %v79_v28, %v83_v29  ;;  %v86_v34 = vld [vmem:[%s2976_s4 + $0x110] sm:$0xff]  ;;  %v87_v36 = vld [vmem:[%s2976_s4 + $0x118] sm:$0xff]  ;;  %v1921_v39 = vcombine.low %v79_v28, %v83_v29  ;;  %v2050_v9 = vld [vmem:[%s2983_s0 + $0x28] sm:$0xff]  }
  0x13   :  { %540 = vmatprep.subr.bf16.mxu0 %v1924_v37  ;;  %663 = vmatprep.subr.bf16.mxu1 %v1926_v38  ;;  %v90_v35 = vld [vmem:[%s2976_s4 + $0x130] sm:$0xff]  ;;  %v91_v37 = vld [vmem:[%s2976_s4 + $0x138] sm:$0xff]  ;;  %v1919_v38 = vcombine.low %v78_v26, %v82_v27  ;;  %v2053_v12 = vld [vmem:[%s2983_s0 + $0x40] sm:$0xff]  }
  0x14   :  { %v1928_v40 = vcombine.high %v86_v34, %v90_v35  ;;  %v2432_v41 = vld [vmem:[%s2983_s0 + $0x10] sm:$0xff]   ;;  %v1930_v42 = vcombine.high %v87_v36, %v91_v37  ;;  %v1927_v47 = vcombine.low %v86_v34, %v90_v35  ;;  %v1929_v48 = vcombine.low %v87_v36, %v91_v37  ;;  %v107_v54 = vld [vmem:[%s2976_s4 + $0x1b8] sm:$0xff] }
  0x15   :  { %v2465_v58 = vld [vmem:[%s2983_s0 + $0x18] sm:$0xff]   ;;  %v2051_v10 = vld [vmem:[%s2983_s0 + $0x30] sm:$0xff]  }
  0x16   :  { %541 = vmatpush1.bf16.msra.mxu0 %v1923_v43  ;;  %664 = vmatpush1.bf16.msra.mxu1 %v1925_v44  ;;  %v94_v43 = vld [vmem:[%s2976_s4 + $0x150] sm:$0xff]  ;;  %v115_v63 = vld [vmem:[%s2976_s4 + $0x1f8] sm:$0xff] }
  0x17   :  { %542 = vmatprep.subr.bf16.mxu0 %v1932_v45  ;;  %665 = vmatprep.subr.bf16.mxu1 %v1934_v46  ;;  %v98_v44 = vld [vmem:[%s2976_s4 + $0x170] sm:$0xff]  ;;  %v95_v45 = vld [vmem:[%s2976_s4 + $0x158] sm:$0xff] }
  0x18   :  { %v99_v46 = vld [vmem:[%s2976_s4 + $0x178] sm:$0xff]  ;;  %v1936_v49 = vcombine.high %v94_v43, %v98_v44 }
  0x19   :  { %v1938_v50 = vcombine.high %v95_v45, %v99_v46  ;;  %v1937_v56 = vcombine.low %v95_v45, %v99_v46 }
  0x1a   :  { %543 = vmatpush1.bf16.msra.mxu0 %v1931_v51  ;;  %666 = vmatpush1.bf16.msra.mxu1 %v1933_v52  ;;  %v102_v51 = vld [vmem:[%s2976_s4 + $0x190] sm:$0xff] }
  0x1b   :  { %544 = vmatprep.subr.bf16.mxu0 %v1940_v53  ;;  %667 = vmatprep.subr.bf16.mxu1 %v1942_v55  ;;  %v106_v52 = vld [vmem:[%s2976_s4 + $0x1b0] sm:$0xff]  ;;  %v103_v53 = vld [vmem:[%s2976_s4 + $0x198] sm:$0xff]  ;;  %v1935_v55 = vcombine.low %v94_v43, %v98_v44 }
  0x1c   :  { %v1944_v57 = vcombine.high %v102_v51, %v106_v52  ;;  %v1943_v0 = vcombine.low %v102_v51, %v106_v52  ;;  %v1945_v1 = vcombine.low %v103_v53, %v107_v54 }
  0x1e   :  { %545 = vmatpush1.bf16.msra.mxu0 %v1939_v59  ;;  %668 = vmatpush1.bf16.msra.mxu1 %v1941_v60  ;;  %v1946_v59 = vcombine.high %v103_v53, %v107_v54  ;;  %v110_v60 = vld [vmem:[%s2976_s4 + $0x1d0] sm:$0xff]  ;;  %v1168_v54 = vld [vmem:[%s2985_s2] sm:$0xff] }
  0x1f   :  { %546 = vmatprep.subr.bf16.mxu0 %v1948_v61  ;;  %669 = vmatprep.subr.bf16.mxu1 %v1950_v62  ;;  %v114_v61 = vld [vmem:[%s2976_s4 + $0x1f0] sm:$0xff]  ;;  %v111_v62 = vld [vmem:[%s2976_s4 + $0x1d8] sm:$0xff]  ;;  %1169 = vst [vmem:[#allocation3] sm:$0xff] %v1168_v54 }
  0x20   :  { %v1952_v2 = vcombine.high %v110_v60, %v114_v61 }
  0x22   :  { %547 = vmatpush1.bf16.msra.mxu0 %v1947_v4  ;;  %670 = vmatpush1.bf16.msra.mxu1 %v1949_v5  ;;  %v1954_v4 = vcombine.high %v111_v62, %v115_v63  ;;  %v1951_v5 = vcombine.low %v110_v60, %v114_v61 }
  0x23   :  { %778 = vmatprep.subr.bf16.mxu0 %v1896_v6  ;;  %901 = vmatprep.subr.bf16.mxu1 %v1898_v7  ;;  %v1953_v6 = vcombine.low %v111_v62, %v115_v63  ;;  %v2049_v7 = vld [vmem:[%s2983_s0 + $0x20] sm:$0xff]  }
  0x25   :  { %565 = vmatmul.mubr.bf16.vlgmr.msra.gmra.mrb[0].mxu0 %v2366_v8  ;;  %688 = vmatmul.mubr.bf16.vlgmr.msra.gmra.mrb[0].mxu1 %v2366_v8 }
  0x26   :  { %779 = vmatpush1.bf16.msra.mxu0 %v1895_v11  ;;  %902 = vmatpush1.bf16.msra.mxu1 %v1897_v14  ;;  %v2052_v11 = vld [vmem:[%s2983_s0 + $0x38] sm:$0xff]  }
  0x27   :  { %574 = vmatprep.mubr.bf16.mxu0 %v2191_v3  ;;  %697 = vmatprep.mubr.bf16.mxu1 %v2191_v3 }
  0x28   :  { %780 = vmatprep.subr.bf16.mxu0 %v1904_v15  ;;  %903 = vmatprep.subr.bf16.mxu1 %v1906_v18  ;;  %v2538_v15 = vld [vmem:[%s2984_s5] sm:$0xff] }
  0x2a   :  { %781 = vmatpush1.bf16.msra.mxu0 %v1903_v21  ;;  %904 = vmatpush1.bf16.msra.mxu1 %v1905_v22 }
  0x2b   :  { %782 = vmatprep.subr.bf16.mxu0 %v1912_v23  ;;  %905 = vmatprep.subr.bf16.mxu1 %v1914_v24 }
  0x2d   :  { %575 = vmatmul.mubr.bf16.gmra.mrb[4].mxu0 %v2399_v25  ;;  %698 = vmatmul.mubr.bf16.gmra.mrb[4].mxu1 %v2399_v25 }
  0x2e   :  { %584 = vmatprep.mubr.bf16.mxu0 %v2191_v3  ;;  %707 = vmatprep.mubr.bf16.mxu1 %v2191_v3 }
  0x2f   :  { %783 = vmatpush1.bf16.msra.mxu0 %v1911_v30  ;;  %906 = vmatpush1.bf16.msra.mxu1 %v1913_v31 }
  0x30   :  { %784 = vmatprep.subr.bf16.mxu0 %v1920_v32  ;;  %907 = vmatprep.subr.bf16.mxu1 %v1922_v33 }
  0x33   :  { %785 = vmatpush1.bf16.msra.mxu0 %v1919_v38  ;;  %908 = vmatpush1.bf16.msra.mxu1 %v1921_v39 }
  0x34   :  { %786 = vmatprep.subr.bf16.mxu0 %v1928_v40  ;;  %909 = vmatprep.subr.bf16.mxu1 %v1930_v42 }
  0x35   :  { %585 = vmatmul.mubr.bf16.gmra.mrb[8].mxu0 %v2432_v41  ;;  %708 = vmatmul.mubr.bf16.gmra.mrb[8].mxu1 %v2432_v41 }
  0x36   :  { %594 = vmatprep.mubr.bf16.mxu0 %v2191_v3  ;;  %717 = vmatprep.mubr.bf16.mxu1 %v2191_v3 }
  0x37   :  { %787 = vmatpush1.bf16.msra.mxu0 %v1927_v47  ;;  %910 = vmatpush1.bf16.msra.mxu1 %v1929_v48 }
  0x38   :  { %788 = vmatprep.subr.bf16.mxu0 %v1936_v49  ;;  %911 = vmatprep.subr.bf16.mxu1 %v1938_v50 }
  0x3b   :  { %789 = vmatpush1.bf16.msra.mxu0 %v1935_v55  ;;  %912 = vmatpush1.bf16.msra.mxu1 %v1937_v56  ;;  %v1170_v55 = vld [vmem:[%s2986_s3] sm:$0xff]  ;;  %v1955_v56 = vld [vmem:[%s2985_s2 + $0x8] sm:$0xff]  ;;  %s2727_s2 = smov 0  }
  0x3c   :  { %790 = vmatprep.subr.bf16.mxu0 %v1944_v57  ;;  %913 = vmatprep.subr.bf16.mxu1 %v1946_v59  ;;  %1171 = vst [vmem:[#allocation4] sm:$0xff] %v1170_v55  ;;  %1174 = vst [vmem:[#allocation5] sm:$0xff] %v1955_v56  ;;  %v1956_v57 = vld [vmem:[%s2986_s3 + $0x8] sm:$0xff] }
  0x3d   :  { %595 = vmatmul.mubr.bf16.gmra.mrb[12].mxu0 %v2465_v58  ;;  %718 = vmatmul.mubr.bf16.gmra.mrb[12].mxu1 %v2465_v58  ;;  %1177 = vst [vmem:[#allocation6] sm:$0xff] %v1956_v57 }
  0x3e   :  { %604 = vmatprep.mubr.bf16.mxu0 %v2191_v3  ;;  %727 = vmatprep.mubr.bf16.mxu1 %v2191_v3 }
  0x3f   :  { %791 = vmatpush1.bf16.msra.mxu0 %v1943_v0  ;;  %914 = vmatpush1.bf16.msra.mxu1 %v1945_v1 }
  0x40   :  { %792 = vmatprep.subr.bf16.mxu0 %v1952_v2  ;;  %915 = vmatprep.subr.bf16.mxu1 %v1954_v4 }
  0x43   :  { %793 = vmatpush1.bf16.msra.mxu0 %v1951_v5  ;;  %916 = vmatpush1.bf16.msra.mxu1 %v1953_v6 }
  0x45   :  { %605 = vmatmul.mubr.bf16.gmra.mrb[16].mxu0 %v2049_v7  ;;  %728 = vmatmul.mubr.bf16.gmra.mrb[16].mxu1 %v2049_v7 }
  0x46   :  { %614 = vmatprep.mubr.bf16.mxu0 %v2191_v3  ;;  %737 = vmatprep.mubr.bf16.mxu1 %v2191_v3 }
  0x4d   :  { %615 = vmatmul.mubr.bf16.gmra.mrb[20].mxu0 %v2050_v9  ;;  %738 = vmatmul.mubr.bf16.gmra.mrb[20].mxu1 %v2050_v9 }
  0x4e   :  { %624 = vmatprep.mubr.bf16.mxu0 %v2191_v3  ;;  %747 = vmatprep.mubr.bf16.mxu1 %v2191_v3 }
  0x55   :  { %625 = vmatmul.mubr.bf16.gmra.mrb[24].mxu0 %v2051_v10  ;;  %748 = vmatmul.mubr.bf16.gmra.mrb[24].mxu1 %v2051_v10 }
  0x56   :  { %634 = vmatprep.mubr.bf16.mxu0 %v2191_v3  ;;  %757 = vmatprep.mubr.bf16.mxu1 %v2191_v3 }
  0x5d   :  { %635 = vmatmul.mubr.bf16.gmra.mrb[28].mxu0 %v2052_v11  ;;  %758 = vmatmul.mubr.bf16.gmra.mrb[28].mxu1 %v2052_v11 }
  0x5e   :  { %644 = vmatprep.mubr.bf16.mxu0 %v2191_v3  ;;  %767 = vmatprep.mubr.bf16.mxu1 %v2191_v3 }
  0x65   :  { %645 = vmatmul.mubr.bf16.gmra.mrb[32].mxu0 %v2053_v12  ;;  %768 = vmatmul.mubr.bf16.gmra.mrb[32].mxu1 %v2053_v12 }
  0x66   :  { %810 = vmatprep.mubr.bf16.mxu0 %v2191_v3  ;;  %933 = vmatprep.mubr.bf16.mxu1 %v2191_v3 }
  0x6d   :  { %811 = vmatmul.mubr.bf16.vlgmr.msra.gmra.mrb[36].mxu0 %v2366_v8  ;;  %934 = vmatmul.mubr.bf16.vlgmr.msra.gmra.mrb[36].mxu1 %v2366_v8  ;;  %v118_v8 = vlaneseq }
  0x6e   :  { %820 = vmatprep.mubr.bf16.mxu0 %v2191_v3  ;;  %943 = vmatprep.mubr.bf16.mxu1 %v2191_v3 }
  0x6f   :  { %v2532_v13 = vshrl.u32 %v118_v8, 7 }
  0x71   :  { %v120_v14 = vsub.s32 0, %v2532_v13  ;;  %v128_v16 = vsub.s32 2, %v2532_v13  ;;  %v124_v17 = vsub.s32 1, %v2532_v13  ;;  %v132_v18 = vsub.s32 3, %v2532_v13 }
  0x73   :  { %v2547_v19 = vrot.slane %v2538_v15, %v128_v16  ;;  %v2550_v20 = vrot.slane %v2538_v15, %v124_v17  ;;  %v2553_v21 = vrot.slane %v2538_v15, %v132_v18 }
  0x75   :  { %821 = vmatmul.mubr.bf16.gmra.mrb[40].mxu0 %v2399_v25  ;;  %944 = vmatmul.mubr.bf16.gmra.mrb[40].mxu1 %v2399_v25 }
  0x76   :  { %830 = vmatprep.mubr.bf16.mxu0 %v2191_v3  ;;  %953 = vmatprep.mubr.bf16.mxu1 %v2191_v3 }
  0x7d   :  { %831 = vmatmul.mubr.bf16.gmra.mrb[44].mxu0 %v2432_v41  ;;  %954 = vmatmul.mubr.bf16.gmra.mrb[44].mxu1 %v2432_v41 }
  0x7e   :  { %840 = vmatprep.mubr.bf16.mxu0 %v2191_v3  ;;  %963 = vmatprep.mubr.bf16.mxu1 %v2191_v3 }
  0x85   :  { %841 = vmatmul.mubr.bf16.gmra.mrb[48].mxu0 %v2465_v58  ;;  %964 = vmatmul.mubr.bf16.gmra.mrb[48].mxu1 %v2465_v58 }
  0x86   :  { %850 = vmatprep.mubr.bf16.mxu0 %v2191_v3  ;;  %973 = vmatprep.mubr.bf16.mxu1 %v2191_v3 }
  0x8d   :  { %851 = vmatmul.mubr.bf16.gmra.mrb[52].mxu0 %v2049_v7  ;;  %974 = vmatmul.mubr.bf16.gmra.mrb[52].mxu1 %v2049_v7 }
  0x8e   :  { %860 = vmatprep.mubr.bf16.mxu0 %v2191_v3  ;;  %983 = vmatprep.mubr.bf16.mxu1 %v2191_v3 }
  0x95   :  { %861 = vmatmul.mubr.bf16.gmra.mrb[56].mxu0 %v2050_v9  ;;  %984 = vmatmul.mubr.bf16.gmra.mrb[56].mxu1 %v2050_v9 }
  0x96   :  { %870 = vmatprep.mubr.bf16.mxu0 %v2191_v3  ;;  %993 = vmatprep.mubr.bf16.mxu1 %v2191_v3 }
  0x9d   :  { %871 = vmatmul.mubr.bf16.gmra.mrb[60].mxu0 %v2051_v10  ;;  %994 = vmatmul.mubr.bf16.gmra.mrb[60].mxu1 %v2051_v10 }
  0x9e   :  { %880 = vmatprep.mubr.bf16.mxu0 %v2191_v3  ;;  %1003 = vmatprep.mubr.bf16.mxu1 %v2191_v3 }
  0xa5   :  { %881 = vmatmul.mubr.bf16.gmra.mrb[64].mxu0 %v2052_v11  ;;  %1004 = vmatmul.mubr.bf16.gmra.mrb[64].mxu1 %v2052_v11 }
  0xa6   :  { %890 = vmatprep.mubr.bf16.mxu0 %v2191_v3  ;;  %1013 = vmatprep.mubr.bf16.mxu1 %v2191_v3  ;;  %v2544_v3 = vrot.slane %v2538_v15, %v120_v14 }
  0xad   :  { %891 = vmatmul.mubr.bf16.gmra.mrb[68].mxu0 %v2053_v12  ;;  %1014 = vmatmul.mubr.bf16.gmra.mrb[68].mxu1 %v2053_v12 }
  0xf8   :  { %v566_v22 = vpop.f32.mrb[0].mxu0  ;;  %v689_v24 = vpop.f32.mrb[0].mxu1 }
  0xf9   :  { %v567_v23 = vadd.f32 %v566_v22, %v2544_v3  ;;  %v568_v25 = vpop.f32.mrb[1].mxu0  ;;  %v690_v26 = vadd.f32 %v689_v24, %v2547_v19  ;;  %v691_v28 = vpop.f32.mrb[1].mxu1 }
  0xfa   :  { %v569_v27 = vadd.f32 %v568_v25, %v2550_v20  ;;  %v570_v29 = vpop.f32.mrb[2].mxu0  ;;  %v692_v30 = vadd.f32 %v691_v28, %v2553_v21  ;;  %v693_v32 = vpop.f32.mrb[2].mxu1 }
  0xfb   :  { %1024 = vst [vmem:[#allocation2] sm:$0xff] %v567_v23  ;;  %v571_v31 = vadd.f32 %v570_v29, %v2544_v3  ;;  %v572_v33 = vpop.f32.mrb[3].mxu0  ;;  %1026 = vst [vmem:[#allocation2 + $0x10] sm:$0xff] %v690_v26  ;;  %v694_v34 = vadd.f32 %v693_v32, %v2547_v19  ;;  %v695_v36 = vpop.f32.mrb[3].mxu1 }
  0xfc   :  { %1025 = vst [vmem:[#allocation2 + $0x8] sm:$0xff] %v569_v27  ;;  %v573_v35 = vadd.f32 %v572_v33, %v2550_v20  ;;  %1027 = vst [vmem:[#allocation2 + $0x18] sm:$0xff] %v692_v30  ;;  %v696_v37 = vadd.f32 %v695_v36, %v2553_v21 }
  0xfd   :  { %1032 = vst [vmem:[#allocation2 + $0x40] sm:$0xff] %v571_v31  ;;  %1034 = vst [vmem:[#allocation2 + $0x50] sm:$0xff] %v694_v34 }
  0xfe   :  { %1033 = vst [vmem:[#allocation2 + $0x48] sm:$0xff] %v573_v35  ;;  %1035 = vst [vmem:[#allocation2 + $0x58] sm:$0xff] %v696_v37 }
 0x100   :  { %v576_v38 = vpop.f32.mrb[4].mxu0  ;;  %v699_v40 = vpop.f32.mrb[4].mxu1 }
 0x101   :  { %v577_v39 = vadd.f32 %v576_v38, %v2544_v3  ;;  %v578_v41 = vpop.f32.mrb[5].mxu0  ;;  %v700_v42 = vadd.f32 %v699_v40, %v2547_v19  ;;  %v701_v44 = vpop.f32.mrb[5].mxu1 }
 0x102   :  { %v579_v43 = vadd.f32 %v578_v41, %v2550_v20  ;;  %v580_v45 = vpop.f32.mrb[6].mxu0  ;;  %v702_v46 = vadd.f32 %v701_v44, %v2553_v21  ;;  %v703_v48 = vpop.f32.mrb[6].mxu1 }
 0x103   :  { %1040 = vst [vmem:[#allocation2 + $0x80] sm:$0xff] %v577_v39  ;;  %v581_v47 = vadd.f32 %v580_v45, %v2544_v3  ;;  %v582_v49 = vpop.f32.mrb[7].mxu0  ;;  %1042 = vst [vmem:[#allocation2 + $0x90] sm:$0xff] %v700_v42  ;;  %v704_v50 = vadd.f32 %v703_v48, %v2547_v19  ;;  %v705_v52 = vpop.f32.mrb[7].mxu1 }
 0x104   :  { %1041 = vst [vmem:[#allocation2 + $0x88] sm:$0xff] %v579_v43  ;;  %v583_v51 = vadd.f32 %v582_v49, %v2550_v20  ;;  %1043 = vst [vmem:[#allocation2 + $0x98] sm:$0xff] %v702_v46  ;;  %v706_v53 = vadd.f32 %v705_v52, %v2553_v21 }
 0x105   :  { %1048 = vst [vmem:[#allocation2 + $0xc0] sm:$0xff] %v581_v47  ;;  %1050 = vst [vmem:[#allocation2 + $0xd0] sm:$0xff] %v704_v50 }
 0x106   :  { %1049 = vst [vmem:[#allocation2 + $0xc8] sm:$0xff] %v583_v51  ;;  %1051 = vst [vmem:[#allocation2 + $0xd8] sm:$0xff] %v706_v53 }
 0x108   :  { %v586_v58 = vpop.f32.mrb[8].mxu0  ;;  %v709_v60 = vpop.f32.mrb[8].mxu1 }
 0x109   :  { %v587_v59 = vadd.f32 %v586_v58, %v2544_v3  ;;  %v588_v61 = vpop.f32.mrb[9].mxu0  ;;  %v710_v62 = vadd.f32 %v709_v60, %v2547_v19  ;;  %v711_v0 = vpop.f32.mrb[9].mxu1 }
 0x10a   :  { %v589_v63 = vadd.f32 %v588_v61, %v2550_v20  ;;  %v590_v1 = vpop.f32.mrb[10].mxu0  ;;  %v712_v2 = vadd.f32 %v711_v0, %v2553_v21  ;;  %v713_v5 = vpop.f32.mrb[10].mxu1 }
 0x10b   :  { %1056 = vst [vmem:[#allocation2 + $0x100] sm:$0xff] %v587_v59  ;;  %v591_v4 = vadd.f32 %v590_v1, %v2544_v3  ;;  %v592_v6 = vpop.f32.mrb[11].mxu0  ;;  %1058 = vst [vmem:[#allocation2 + $0x110] sm:$0xff] %v710_v62  ;;  %v714_v7 = vadd.f32 %v713_v5, %v2547_v19  ;;  %v715_v10 = vpop.f32.mrb[11].mxu1 }
 0x10c   :  { %1057 = vst [vmem:[#allocation2 + $0x108] sm:$0xff] %v589_v63  ;;  %v593_v9 = vadd.f32 %v592_v6, %v2550_v20  ;;  %1059 = vst [vmem:[#allocation2 + $0x118] sm:$0xff] %v712_v2  ;;  %v716_v11 = vadd.f32 %v715_v10, %v2553_v21 }
 0x10d   :  { %1064 = vst [vmem:[#allocation2 + $0x140] sm:$0xff] %v591_v4  ;;  %1066 = vst [vmem:[#allocation2 + $0x150] sm:$0xff] %v714_v7 }
 0x10e   :  { %1065 = vst [vmem:[#allocation2 + $0x148] sm:$0xff] %v593_v9  ;;  %1067 = vst [vmem:[#allocation2 + $0x158] sm:$0xff] %v716_v11 }
 0x110   :  { %v596_v12 = vpop.f32.mrb[12].mxu0  ;;  %v719_v14 = vpop.f32.mrb[12].mxu1 }
 0x111   :  { %v597_v8 = vadd.f32 %v596_v12, %v2544_v3  ;;  %v598_v16 = vpop.f32.mrb[13].mxu0  ;;  %v720_v17 = vadd.f32 %v719_v14, %v2547_v19  ;;  %v721_v22 = vpop.f32.mrb[13].mxu1 }
 0x112   :  { %v599_v18 = vadd.f32 %v598_v16, %v2550_v20  ;;  %v600_v23 = vpop.f32.mrb[14].mxu0  ;;  %v722_v24 = vadd.f32 %v721_v22, %v2553_v21  ;;  %v723_v26 = vpop.f32.mrb[14].mxu1 }
 0x113   :  { %1072 = vst [vmem:[#allocation2 + $0x180] sm:$0xff] %v597_v8  ;;  %v601_v25 = vadd.f32 %v600_v23, %v2544_v3  ;;  %v602_v27 = vpop.f32.mrb[15].mxu0  ;;  %1074 = vst [vmem:[#allocation2 + $0x190] sm:$0xff] %v720_v17  ;;  %v724_v28 = vadd.f32 %v723_v26, %v2547_v19  ;;  %v725_v30 = vpop.f32.mrb[15].mxu1 }
 0x114   :  { %1073 = vst [vmem:[#allocation2 + $0x188] sm:$0xff] %v599_v18  ;;  %v603_v29 = vadd.f32 %v602_v27, %v2550_v20  ;;  %1075 = vst [vmem:[#allocation2 + $0x198] sm:$0xff] %v722_v24  ;;  %v726_v31 = vadd.f32 %v725_v30, %v2553_v21 }
 0x115   :  { %1080 = vst [vmem:[#allocation2 + $0x1c0] sm:$0xff] %v601_v25  ;;  %1082 = vst [vmem:[#allocation2 + $0x1d0] sm:$0xff] %v724_v28 }
 0x116   :  { %1081 = vst [vmem:[#allocation2 + $0x1c8] sm:$0xff] %v603_v29  ;;  %1083 = vst [vmem:[#allocation2 + $0x1d8] sm:$0xff] %v726_v31 }
 0x118   :  { %v606_v32 = vpop.f32.mrb[16].mxu0  ;;  %v729_v34 = vpop.f32.mrb[16].mxu1 }
 0x119   :  { %v607_v33 = vadd.f32 %v606_v32, %v2544_v3  ;;  %v608_v35 = vpop.f32.mrb[17].mxu0  ;;  %v730_v36 = vadd.f32 %v729_v34, %v2547_v19  ;;  %v731_v38 = vpop.f32.mrb[17].mxu1 }
 0x11a   :  { %v609_v37 = vadd.f32 %v608_v35, %v2550_v20  ;;  %v610_v39 = vpop.f32.mrb[18].mxu0  ;;  %v732_v40 = vadd.f32 %v731_v38, %v2553_v21  ;;  %v733_v42 = vpop.f32.mrb[18].mxu1 }
 0x11b   :  { %1088 = vst [vmem:[#allocation2 + $0x200] sm:$0xff] %v607_v33  ;;  %v611_v41 = vadd.f32 %v610_v39, %v2544_v3  ;;  %v612_v43 = vpop.f32.mrb[19].mxu0  ;;  %1090 = vst [vmem:[#allocation2 + $0x210] sm:$0xff] %v730_v36  ;;  %v734_v44 = vadd.f32 %v733_v42, %v2547_v19  ;;  %v735_v46 = vpop.f32.mrb[19].mxu1  ;;  %v136_v42 = vsub.s32 4, %v2532_v13 }
 0x11c   :  { %1089 = vst [vmem:[#allocation2 + $0x208] sm:$0xff] %v609_v37  ;;  %v613_v45 = vadd.f32 %v612_v43, %v2550_v20  ;;  %1091 = vst [vmem:[#allocation2 + $0x218] sm:$0xff] %v732_v40  ;;  %v736_v47 = vadd.f32 %v735_v46, %v2553_v21 }
 0x11d   :  { %1096 = vst [vmem:[#allocation2 + $0x240] sm:$0xff] %v611_v41  ;;  %1098 = vst [vmem:[#allocation2 + $0x250] sm:$0xff] %v734_v44 }
 0x11e   :  { %1097 = vst [vmem:[#allocation2 + $0x248] sm:$0xff] %v613_v45  ;;  %1099 = vst [vmem:[#allocation2 + $0x258] sm:$0xff] %v736_v47  ;;  %v144_v47 = vsub.s32 6, %v2532_v13 }
 0x120   :  { %v616_v48 = vpop.f32.mrb[20].mxu0  ;;  %v739_v50 = vpop.f32.mrb[20].mxu1 }
 0x121   :  { %v617_v49 = vadd.f32 %v616_v48, %v2544_v3  ;;  %v618_v51 = vpop.f32.mrb[21].mxu0  ;;  %v740_v52 = vadd.f32 %v739_v50, %v2547_v19  ;;  %v741_v54 = vpop.f32.mrb[21].mxu1  ;;  %v140_v48 = vsub.s32 5, %v2532_v13 }
 0x122   :  { %v619_v53 = vadd.f32 %v618_v51, %v2550_v20  ;;  %v620_v55 = vpop.f32.mrb[22].mxu0  ;;  %v742_v56 = vadd.f32 %v741_v54, %v2553_v21  ;;  %v743_v58 = vpop.f32.mrb[22].mxu1 }
 0x123   :  { %1104 = vst [vmem:[#allocation2 + $0x280] sm:$0xff] %v617_v49  ;;  %v621_v57 = vadd.f32 %v620_v55, %v2544_v3  ;;  %v622_v59 = vpop.f32.mrb[23].mxu0  ;;  %1106 = vst [vmem:[#allocation2 + $0x290] sm:$0xff] %v740_v52  ;;  %v744_v60 = vadd.f32 %v743_v58, %v2547_v19  ;;  %v745_v62 = vpop.f32.mrb[23].mxu1  ;;  %v2644_v58 = vrot.slane %v2538_v15, %v136_v42 }
 0x124   :  { %1105 = vst [vmem:[#allocation2 + $0x288] sm:$0xff] %v619_v53  ;;  %v623_v61 = vadd.f32 %v622_v59, %v2550_v20  ;;  %1107 = vst [vmem:[#allocation2 + $0x298] sm:$0xff] %v742_v56  ;;  %v746_v63 = vadd.f32 %v745_v62, %v2553_v21  ;;  %v148_v53 = vsub.s32 7, %v2532_v13  ;;  %v2650_v13 = vrot.slane %v2538_v15, %v140_v48 }
 0x125   :  { %1112 = vst [vmem:[#allocation2 + $0x2c0] sm:$0xff] %v621_v57  ;;  %1114 = vst [vmem:[#allocation2 + $0x2d0] sm:$0xff] %v744_v60 }
 0x126   :  { %1113 = vst [vmem:[#allocation2 + $0x2c8] sm:$0xff] %v623_v61  ;;  %1115 = vst [vmem:[#allocation2 + $0x2d8] sm:$0xff] %v746_v63 }
 0x128   :  { %v626_v0 = vpop.f32.mrb[24].mxu0  ;;  %v749_v2 = vpop.f32.mrb[24].mxu1 }
 0x129   :  { %v627_v1 = vadd.f32 %v626_v0, %v2544_v3  ;;  %v628_v4 = vpop.f32.mrb[25].mxu0  ;;  %v750_v5 = vadd.f32 %v749_v2, %v2547_v19  ;;  %v751_v7 = vpop.f32.mrb[25].mxu1 }
 0x12a   :  { %v629_v6 = vadd.f32 %v628_v4, %v2550_v20  ;;  %v630_v9 = vpop.f32.mrb[26].mxu0  ;;  %v752_v10 = vadd.f32 %v751_v7, %v2553_v21  ;;  %v753_v12 = vpop.f32.mrb[26].mxu1 }
 0x12b   :  { %1120 = vst [vmem:[#allocation2 + $0x300] sm:$0xff] %v627_v1  ;;  %v631_v11 = vadd.f32 %v630_v9, %v2544_v3  ;;  %v632_v8 = vpop.f32.mrb[27].mxu0  ;;  %1122 = vst [vmem:[#allocation2 + $0x310] sm:$0xff] %v750_v5  ;;  %v754_v14 = vadd.f32 %v753_v12, %v2547_v19  ;;  %v755_v17 = vpop.f32.mrb[27].mxu1 }
 0x12c   :  { %1121 = vst [vmem:[#allocation2 + $0x308] sm:$0xff] %v629_v6  ;;  %v633_v16 = vadd.f32 %v632_v8, %v2550_v20  ;;  %1123 = vst [vmem:[#allocation2 + $0x318] sm:$0xff] %v752_v10  ;;  %v756_v18 = vadd.f32 %v755_v17, %v2553_v21 }
 0x12d   :  { %1128 = vst [vmem:[#allocation2 + $0x340] sm:$0xff] %v631_v11  ;;  %1130 = vst [vmem:[#allocation2 + $0x350] sm:$0xff] %v754_v14 }
 0x12e   :  { %1129 = vst [vmem:[#allocation2 + $0x348] sm:$0xff] %v633_v16  ;;  %1131 = vst [vmem:[#allocation2 + $0x358] sm:$0xff] %v756_v18 }
 0x130   :  { %v636_v22 = vpop.f32.mrb[28].mxu0  ;;  %v759_v24 = vpop.f32.mrb[28].mxu1 }
 0x131   :  { %v637_v23 = vadd.f32 %v636_v22, %v2544_v3  ;;  %v638_v25 = vpop.f32.mrb[29].mxu0  ;;  %v760_v26 = vadd.f32 %v759_v24, %v2547_v19  ;;  %v761_v28 = vpop.f32.mrb[29].mxu1 }
 0x132   :  { %v639_v27 = vadd.f32 %v638_v25, %v2550_v20  ;;  %v640_v29 = vpop.f32.mrb[30].mxu0  ;;  %v762_v30 = vadd.f32 %v761_v28, %v2553_v21  ;;  %v763_v32 = vpop.f32.mrb[30].mxu1 }
 0x133   :  { %1136 = vst [vmem:[#allocation2 + $0x380] sm:$0xff] %v637_v23  ;;  %v641_v31 = vadd.f32 %v640_v29, %v2544_v3  ;;  %v642_v33 = vpop.f32.mrb[31].mxu0  ;;  %1138 = vst [vmem:[#allocation2 + $0x390] sm:$0xff] %v760_v26  ;;  %v764_v34 = vadd.f32 %v763_v32, %v2547_v19  ;;  %v765_v36 = vpop.f32.mrb[31].mxu1 }
 0x134   :  { %1137 = vst [vmem:[#allocation2 + $0x388] sm:$0xff] %v639_v27  ;;  %v643_v35 = vadd.f32 %v642_v33, %v2550_v20  ;;  %1139 = vst [vmem:[#allocation2 + $0x398] sm:$0xff] %v762_v30  ;;  %v766_v37 = vadd.f32 %v765_v36, %v2553_v21 }
 0x135   :  { %1144 = vst [vmem:[#allocation2 + $0x3c0] sm:$0xff] %v641_v31  ;;  %1146 = vst [vmem:[#allocation2 + $0x3d0] sm:$0xff] %v764_v34 }
 0x136   :  { %1145 = vst [vmem:[#allocation2 + $0x3c8] sm:$0xff] %v643_v35  ;;  %1147 = vst [vmem:[#allocation2 + $0x3d8] sm:$0xff] %v766_v37 }
 0x138   :  { %v646_v38 = vpop.f32.mrb[32].mxu0  ;;  %v769_v40 = vpop.f32.mrb[32].mxu1 }
 0x139   :  { %v647_v39 = vadd.f32 %v646_v38, %v2544_v3  ;;  %v648_v41 = vpop.f32.mrb[33].mxu0  ;;  %v770_v43 = vadd.f32 %v769_v40, %v2547_v19  ;;  %v771_v45 = vpop.f32.mrb[33].mxu1 }
 0x13a   :  { %v649_v44 = vadd.f32 %v648_v41, %v2550_v20  ;;  %v650_v46 = vpop.f32.mrb[34].mxu0  ;;  %v772_v49 = vadd.f32 %v771_v45, %v2553_v21  ;;  %v773_v51 = vpop.f32.mrb[34].mxu1 }
 0x13b   :  { %1152 = vst [vmem:[#allocation2 + $0x400] sm:$0xff] %v647_v39  ;;  %v651_v50 = vadd.f32 %v650_v46, %v2544_v3  ;;  %v652_v52 = vpop.f32.mrb[35].mxu0  ;;  %1154 = vst [vmem:[#allocation2 + $0x410] sm:$0xff] %v770_v43  ;;  %v774_v54 = vadd.f32 %v773_v51, %v2547_v19  ;;  %v775_v56 = vpop.f32.mrb[35].mxu1  ;;  %v2647_v3 = vrot.slane %v2538_v15, %v144_v47 }
 0x13c   :  { %1153 = vst [vmem:[#allocation2 + $0x408] sm:$0xff] %v649_v44  ;;  %v653_v55 = vadd.f32 %v652_v52, %v2550_v20  ;;  %1155 = vst [vmem:[#allocation2 + $0x418] sm:$0xff] %v772_v49  ;;  %v776_v57 = vadd.f32 %v775_v56, %v2553_v21  ;;  %v2653_v19 = vrot.slane %v2538_v15, %v148_v53 }
 0x13d   :  { %1160 = vst [vmem:[#allocation2 + $0x440] sm:$0xff] %v651_v50  ;;  %1162 = vst [vmem:[#allocation2 + $0x450] sm:$0xff] %v774_v54 }
 0x13e   :  { %1161 = vst [vmem:[#allocation2 + $0x448] sm:$0xff] %v653_v55  ;;  %1163 = vst [vmem:[#allocation2 + $0x458] sm:$0xff] %v776_v57 }
 0x140   :  { %v812_v20 = vpop.f32.mrb[36].mxu0  ;;  %v935_v60 = vpop.f32.mrb[36].mxu1 }
 0x141   :  { %v813_v59 = vadd.f32 %v812_v20, %v2644_v58  ;;  %v814_v21 = vpop.f32.mrb[37].mxu0  ;;  %v936_v61 = vadd.f32 %v935_v60, %v2647_v3  ;;  %v937_v63 = vpop.f32.mrb[37].mxu1 }
 0x142   :  { %v815_v62 = vadd.f32 %v814_v21, %v2650_v13  ;;  %v816_v0 = vpop.f32.mrb[38].mxu0  ;;  %v938_v1 = vadd.f32 %v937_v63, %v2653_v19  ;;  %v939_v4 = vpop.f32.mrb[38].mxu1 }
 0x143   :  { %1028 = vst [vmem:[#allocation2 + $0x20] sm:$0xff] %v813_v59  ;;  %v817_v2 = vadd.f32 %v816_v0, %v2644_v58  ;;  %v818_v5 = vpop.f32.mrb[39].mxu0  ;;  %1030 = vst [vmem:[#allocation2 + $0x30] sm:$0xff] %v936_v61  ;;  %v940_v15 = vadd.f32 %v939_v4, %v2647_v3  ;;  %v941_v7 = vpop.f32.mrb[39].mxu1 }
 0x144   :  { %1029 = vst [vmem:[#allocation2 + $0x28] sm:$0xff] %v815_v62  ;;  %v819_v6 = vadd.f32 %v818_v5, %v2650_v13  ;;  %1031 = vst [vmem:[#allocation2 + $0x38] sm:$0xff] %v938_v1  ;;  %v942_v9 = vadd.f32 %v941_v7, %v2653_v19 }
 0x145   :  { %1036 = vst [vmem:[#allocation2 + $0x60] sm:$0xff] %v817_v2  ;;  %1038 = vst [vmem:[#allocation2 + $0x70] sm:$0xff] %v940_v15 }
 0x146   :  { %1037 = vst [vmem:[#allocation2 + $0x68] sm:$0xff] %v819_v6  ;;  %1039 = vst [vmem:[#allocation2 + $0x78] sm:$0xff] %v942_v9 }
 0x148   :  { %v822_v10 = vpop.f32.mrb[40].mxu0  ;;  %v945_v12 = vpop.f32.mrb[40].mxu1 }
 0x149   :  { %v823_v11 = vadd.f32 %v822_v10, %v2644_v58  ;;  %v824_v8 = vpop.f32.mrb[41].mxu0  ;;  %v946_v14 = vadd.f32 %v945_v12, %v2647_v3  ;;  %v947_v17 = vpop.f32.mrb[41].mxu1 }
 0x14a   :  { %v825_v16 = vadd.f32 %v824_v8, %v2650_v13  ;;  %v826_v18 = vpop.f32.mrb[42].mxu0  ;;  %v948_v22 = vadd.f32 %v947_v17, %v2653_v19  ;;  %v949_v24 = vpop.f32.mrb[42].mxu1 }
 0x14b   :  { %1044 = vst [vmem:[#allocation2 + $0xa0] sm:$0xff] %v823_v11  ;;  %v827_v23 = vadd.f32 %v826_v18, %v2644_v58  ;;  %v828_v25 = vpop.f32.mrb[43].mxu0  ;;  %1046 = vst [vmem:[#allocation2 + $0xb0] sm:$0xff] %v946_v14  ;;  %v950_v26 = vadd.f32 %v949_v24, %v2647_v3  ;;  %v951_v28 = vpop.f32.mrb[43].mxu1 }
 0x14c   :  { %1045 = vst [vmem:[#allocation2 + $0xa8] sm:$0xff] %v825_v16  ;;  %v829_v27 = vadd.f32 %v828_v25, %v2650_v13  ;;  %1047 = vst [vmem:[#allocation2 + $0xb8] sm:$0xff] %v948_v22  ;;  %v952_v29 = vadd.f32 %v951_v28, %v2653_v19 }
 0x14d   :  { %1052 = vst [vmem:[#allocation2 + $0xe0] sm:$0xff] %v827_v23  ;;  %1054 = vst [vmem:[#allocation2 + $0xf0] sm:$0xff] %v950_v26 }
 0x14e   :  { %1053 = vst [vmem:[#allocation2 + $0xe8] sm:$0xff] %v829_v27  ;;  %1055 = vst [vmem:[#allocation2 + $0xf8] sm:$0xff] %v952_v29 }
 0x150   :  { %v832_v30 = vpop.f32.mrb[44].mxu0  ;;  %v955_v32 = vpop.f32.mrb[44].mxu1 }
 0x151   :  { %v833_v31 = vadd.f32 %v832_v30, %v2644_v58  ;;  %v834_v33 = vpop.f32.mrb[45].mxu0  ;;  %v956_v34 = vadd.f32 %v955_v32, %v2647_v3  ;;  %v957_v36 = vpop.f32.mrb[45].mxu1 }
 0x152   :  { %v835_v35 = vadd.f32 %v834_v33, %v2650_v13  ;;  %v836_v37 = vpop.f32.mrb[46].mxu0  ;;  %v958_v38 = vadd.f32 %v957_v36, %v2653_v19  ;;  %v959_v40 = vpop.f32.mrb[46].mxu1 }
 0x153   :  { %1060 = vst [vmem:[#allocation2 + $0x120] sm:$0xff] %v833_v31  ;;  %v837_v39 = vadd.f32 %v836_v37, %v2644_v58  ;;  %v838_v41 = vpop.f32.mrb[47].mxu0  ;;  %1062 = vst [vmem:[#allocation2 + $0x130] sm:$0xff] %v956_v34  ;;  %v960_v42 = vadd.f32 %v959_v40, %v2647_v3  ;;  %v961_v44 = vpop.f32.mrb[47].mxu1 }
 0x154   :  { %1061 = vst [vmem:[#allocation2 + $0x128] sm:$0xff] %v835_v35  ;;  %v839_v43 = vadd.f32 %v838_v41, %v2650_v13  ;;  %1063 = vst [vmem:[#allocation2 + $0x138] sm:$0xff] %v958_v38  ;;  %v962_v45 = vadd.f32 %v961_v44, %v2653_v19 }
 0x155   :  { %1068 = vst [vmem:[#allocation2 + $0x160] sm:$0xff] %v837_v39  ;;  %1070 = vst [vmem:[#allocation2 + $0x170] sm:$0xff] %v960_v42 }
 0x156   :  { %1069 = vst [vmem:[#allocation2 + $0x168] sm:$0xff] %v839_v43  ;;  %1071 = vst [vmem:[#allocation2 + $0x178] sm:$0xff] %v962_v45 }
 0x158   :  { %v842_v46 = vpop.f32.mrb[48].mxu0  ;;  %v965_v48 = vpop.f32.mrb[48].mxu1 }
 0x159   :  { %v843_v47 = vadd.f32 %v842_v46, %v2644_v58  ;;  %v844_v49 = vpop.f32.mrb[49].mxu0  ;;  %v966_v50 = vadd.f32 %v965_v48, %v2647_v3  ;;  %v967_v52 = vpop.f32.mrb[49].mxu1 }
 0x15a   :  { %v845_v51 = vadd.f32 %v844_v49, %v2650_v13  ;;  %v846_v53 = vpop.f32.mrb[50].mxu0  ;;  %v968_v54 = vadd.f32 %v967_v52, %v2653_v19  ;;  %v969_v56 = vpop.f32.mrb[50].mxu1 }
 0x15b   :  { %1076 = vst [vmem:[#allocation2 + $0x1a0] sm:$0xff] %v843_v47  ;;  %v847_v55 = vadd.f32 %v846_v53, %v2644_v58  ;;  %v848_v57 = vpop.f32.mrb[51].mxu0  ;;  %1078 = vst [vmem:[#allocation2 + $0x1b0] sm:$0xff] %v966_v50  ;;  %v970_v20 = vadd.f32 %v969_v56, %v2647_v3  ;;  %v971_v60 = vpop.f32.mrb[51].mxu1 }
 0x15c   :  { %1077 = vst [vmem:[#allocation2 + $0x1a8] sm:$0xff] %v845_v51  ;;  %v849_v59 = vadd.f32 %v848_v57, %v2650_v13  ;;  %1079 = vst [vmem:[#allocation2 + $0x1b8] sm:$0xff] %v968_v54  ;;  %v972_v21 = vadd.f32 %v971_v60, %v2653_v19 }
 0x15d   :  { %1084 = vst [vmem:[#allocation2 + $0x1e0] sm:$0xff] %v847_v55  ;;  %1086 = vst [vmem:[#allocation2 + $0x1f0] sm:$0xff] %v970_v20 }
 0x15e   :  { %1085 = vst [vmem:[#allocation2 + $0x1e8] sm:$0xff] %v849_v59  ;;  %1087 = vst [vmem:[#allocation2 + $0x1f8] sm:$0xff] %v972_v21 }
 0x160   :  { %v852_v61 = vpop.f32.mrb[52].mxu0  ;;  %v975_v63 = vpop.f32.mrb[52].mxu1 }
 0x161   :  { %v853_v62 = vadd.f32 %v852_v61, %v2644_v58  ;;  %v854_v0 = vpop.f32.mrb[53].mxu0  ;;  %v976_v1 = vadd.f32 %v975_v63, %v2647_v3  ;;  %v977_v4 = vpop.f32.mrb[53].mxu1 }
 0x162   :  { %v855_v2 = vadd.f32 %v854_v0, %v2650_v13  ;;  %v856_v5 = vpop.f32.mrb[54].mxu0  ;;  %v978_v15 = vadd.f32 %v977_v4, %v2653_v19  ;;  %v979_v7 = vpop.f32.mrb[54].mxu1 }
 0x163   :  { %1092 = vst [vmem:[#allocation2 + $0x220] sm:$0xff] %v853_v62  ;;  %v857_v6 = vadd.f32 %v856_v5, %v2644_v58  ;;  %v858_v9 = vpop.f32.mrb[55].mxu0  ;;  %1094 = vst [vmem:[#allocation2 + $0x230] sm:$0xff] %v976_v1  ;;  %v980_v10 = vadd.f32 %v979_v7, %v2647_v3  ;;  %v981_v12 = vpop.f32.mrb[55].mxu1 }
 0x164   :  { %1093 = vst [vmem:[#allocation2 + $0x228] sm:$0xff] %v855_v2  ;;  %v859_v11 = vadd.f32 %v858_v9, %v2650_v13  ;;  %1095 = vst [vmem:[#allocation2 + $0x238] sm:$0xff] %v978_v15  ;;  %v982_v8 = vadd.f32 %v981_v12, %v2653_v19 }
 0x165   :  { %1100 = vst [vmem:[#allocation2 + $0x260] sm:$0xff] %v857_v6  ;;  %1102 = vst [vmem:[#allocation2 + $0x270] sm:$0xff] %v980_v10 }
 0x166   :  { %1101 = vst [vmem:[#allocation2 + $0x268] sm:$0xff] %v859_v11  ;;  %1103 = vst [vmem:[#allocation2 + $0x278] sm:$0xff] %v982_v8 }
 0x168   :  { %v862_v14 = vpop.f32.mrb[56].mxu0  ;;  %v985_v17 = vpop.f32.mrb[56].mxu1 }
 0x169   :  { %v863_v16 = vadd.f32 %v862_v14, %v2644_v58  ;;  %v864_v18 = vpop.f32.mrb[57].mxu0  ;;  %v986_v22 = vadd.f32 %v985_v17, %v2647_v3  ;;  %v987_v24 = vpop.f32.mrb[57].mxu1 }
 0x16a   :  { %v865_v23 = vadd.f32 %v864_v18, %v2650_v13  ;;  %v866_v25 = vpop.f32.mrb[58].mxu0  ;;  %v988_v26 = vadd.f32 %v987_v24, %v2653_v19  ;;  %v989_v28 = vpop.f32.mrb[58].mxu1 }
 0x16b   :  { %1108 = vst [vmem:[#allocation2 + $0x2a0] sm:$0xff] %v863_v16  ;;  %v867_v27 = vadd.f32 %v866_v25, %v2644_v58  ;;  %v868_v29 = vpop.f32.mrb[59].mxu0  ;;  %1110 = vst [vmem:[#allocation2 + $0x2b0] sm:$0xff] %v986_v22  ;;  %v990_v30 = vadd.f32 %v989_v28, %v2647_v3  ;;  %v991_v32 = vpop.f32.mrb[59].mxu1 }
 0x16c   :  { %1109 = vst [vmem:[#allocation2 + $0x2a8] sm:$0xff] %v865_v23  ;;  %v869_v31 = vadd.f32 %v868_v29, %v2650_v13  ;;  %1111 = vst [vmem:[#allocation2 + $0x2b8] sm:$0xff] %v988_v26  ;;  %v992_v33 = vadd.f32 %v991_v32, %v2653_v19 }
 0x16d   :  { %1116 = vst [vmem:[#allocation2 + $0x2e0] sm:$0xff] %v867_v27  ;;  %1118 = vst [vmem:[#allocation2 + $0x2f0] sm:$0xff] %v990_v30 }
 0x16e   :  { %1117 = vst [vmem:[#allocation2 + $0x2e8] sm:$0xff] %v869_v31  ;;  %1119 = vst [vmem:[#allocation2 + $0x2f8] sm:$0xff] %v992_v33 }
 0x170   :  { %v872_v34 = vpop.f32.mrb[60].mxu0  ;;  %v995_v36 = vpop.f32.mrb[60].mxu1 }
 0x171   :  { %v873_v35 = vadd.f32 %v872_v34, %v2644_v58  ;;  %v874_v37 = vpop.f32.mrb[61].mxu0  ;;  %v996_v38 = vadd.f32 %v995_v36, %v2647_v3  ;;  %v997_v40 = vpop.f32.mrb[61].mxu1 }
 0x172   :  { %v875_v39 = vadd.f32 %v874_v37, %v2650_v13  ;;  %v876_v41 = vpop.f32.mrb[62].mxu0  ;;  %v998_v42 = vadd.f32 %v997_v40, %v2653_v19  ;;  %v999_v44 = vpop.f32.mrb[62].mxu1 }
 0x173   :  { %1124 = vst [vmem:[#allocation2 + $0x320] sm:$0xff] %v873_v35  ;;  %v877_v43 = vadd.f32 %v876_v41, %v2644_v58  ;;  %v878_v45 = vpop.f32.mrb[63].mxu0  ;;  %1126 = vst [vmem:[#allocation2 + $0x330] sm:$0xff] %v996_v38  ;;  %v1000_v46 = vadd.f32 %v999_v44, %v2647_v3  ;;  %v1001_v48 = vpop.f32.mrb[63].mxu1 }
 0x174   :  { %1125 = vst [vmem:[#allocation2 + $0x328] sm:$0xff] %v875_v39  ;;  %v879_v47 = vadd.f32 %v878_v45, %v2650_v13  ;;  %1127 = vst [vmem:[#allocation2 + $0x338] sm:$0xff] %v998_v42  ;;  %v1002_v49 = vadd.f32 %v1001_v48, %v2653_v19 }
 0x175   :  { %1132 = vst [vmem:[#allocation2 + $0x360] sm:$0xff] %v877_v43  ;;  %1134 = vst [vmem:[#allocation2 + $0x370] sm:$0xff] %v1000_v46 }
 0x176   :  { %1133 = vst [vmem:[#allocation2 + $0x368] sm:$0xff] %v879_v47  ;;  %1135 = vst [vmem:[#allocation2 + $0x378] sm:$0xff] %v1002_v49 }
 0x178   :  { %v882_v50 = vpop.f32.mrb[64].mxu0  ;;  %v1005_v52 = vpop.f32.mrb[64].mxu1 }
 0x179   :  { %v883_v51 = vadd.f32 %v882_v50, %v2644_v58  ;;  %v884_v53 = vpop.f32.mrb[65].mxu0  ;;  %v1006_v54 = vadd.f32 %v1005_v52, %v2647_v3  ;;  %v1007_v56 = vpop.f32.mrb[65].mxu1 }
 0x17a   :  { %v885_v55 = vadd.f32 %v884_v53, %v2650_v13  ;;  %v886_v57 = vpop.f32.mrb[66].mxu0  ;;  %v1008_v20 = vadd.f32 %v1007_v56, %v2653_v19  ;;  %v1009_v60 = vpop.f32.mrb[66].mxu1 }
 0x17b   :  { %1140 = vst [vmem:[#allocation2 + $0x3a0] sm:$0xff] %v883_v51  ;;  %v887_v59 = vadd.f32 %v886_v57, %v2644_v58  ;;  %v888_v21 = vpop.f32.mrb[67].mxu0  ;;  %1142 = vst [vmem:[#allocation2 + $0x3b0] sm:$0xff] %v1006_v54  ;;  %v1010_v61 = vadd.f32 %v1009_v60, %v2647_v3  ;;  %v1011_v63 = vpop.f32.mrb[67].mxu1 }
 0x17c   :  { %1141 = vst [vmem:[#allocation2 + $0x3a8] sm:$0xff] %v885_v55  ;;  %v889_v62 = vadd.f32 %v888_v21, %v2650_v13  ;;  %1143 = vst [vmem:[#allocation2 + $0x3b8] sm:$0xff] %v1008_v20  ;;  %v1012_v0 = vadd.f32 %v1011_v63, %v2653_v19 }
 0x17d   :  { %1148 = vst [vmem:[#allocation2 + $0x3e0] sm:$0xff] %v887_v59  ;;  %1150 = vst [vmem:[#allocation2 + $0x3f0] sm:$0xff] %v1010_v61 }
 0x17e   :  { %1149 = vst [vmem:[#allocation2 + $0x3e8] sm:$0xff] %v889_v62  ;;  %1151 = vst [vmem:[#allocation2 + $0x3f8] sm:$0xff] %v1012_v0 }
 0x180   :  { %v892_v1 = vpop.f32.mrb[68].mxu0  ;;  %v1015_v4 = vpop.f32.mrb[68].mxu1 }
 0x181   :  { %v893_v2 = vadd.f32 %v892_v1, %v2644_v58  ;;  %v894_v5 = vpop.f32.mrb[69].mxu0  ;;  %v1016_v15 = vadd.f32 %v1015_v4, %v2647_v3  ;;  %v1017_v7 = vpop.f32.mrb[69].mxu1 }
 0x182   :  { %v895_v6 = vadd.f32 %v894_v5, %v2650_v13  ;;  %v896_v9 = vpop.f32.mrb[70].mxu0  ;;  %v1018_v10 = vadd.f32 %v1017_v7, %v2653_v19  ;;  %v1019_v12 = vpop.f32.mrb[70].mxu1 }
 0x183   :  { %1156 = vst [vmem:[#allocation2 + $0x420] sm:$0xff] %v893_v2  ;;  %v897_v11 = vadd.f32 %v896_v9, %v2644_v58  ;;  %v898_v8 = vpop.f32.mrb[71].mxu0  ;;  %1158 = vst [vmem:[#allocation2 + $0x430] sm:$0xff] %v1016_v15  ;;  %v1020_v14 = vadd.f32 %v1019_v12, %v2647_v3  ;;  %v1021_v17 = vpop.f32.mrb[71].mxu1 }
 0x184   :  { %1157 = vst [vmem:[#allocation2 + $0x428] sm:$0xff] %v895_v6  ;;  %v899_v16 = vadd.f32 %v898_v8, %v2650_v13  ;;  %1159 = vst [vmem:[#allocation2 + $0x438] sm:$0xff] %v1018_v10  ;;  %v1022_v18 = vadd.f32 %v1021_v17, %v2653_v19 }
 0x185   :  { %1164 = vst [vmem:[#allocation2 + $0x460] sm:$0xff] %v897_v11  ;;  %1166 = vst [vmem:[#allocation2 + $0x470] sm:$0xff] %v1020_v14 }
 0x186   :  { %1165 = vst [vmem:[#allocation2 + $0x468] sm:$0xff] %v899_v16  ;;  %1167 = vst [vmem:[#allocation2 + $0x478] sm:$0xff] %v1022_v18 }
 0x187 LB: > { %v2055_v58 = vld [vmem:[%s2977_s6 + $0x4] ss:$16 sps:$4 sm:$0xff]   ;;  %v2057_v3 = vld [vmem:[%s2977_s6] ss:$16 sps:$4 sm:$0xff]   ;;  %v2192_v13 = vmov 0   ;;  %v2822_v48 = vld [vmem:[#allocation3] sm:$0xff]  ;;  %s2189_s2 = sphi %s2727_s2, %s1183_s2  }
 0x188   : > { %1429 = vmatprep.mubr.bf16.mxu0 %v2192_v13  ;;  %1470 = vmatprep.mubr.bf16.mxu1 %v2192_v13  ;;  %v2058_v19 = vld [vmem:[%s2977_s6 + $0x24] ss:$16 sps:$4 sm:$0xff]   ;;  %v2060_v22 = vld [vmem:[%s2977_s6 + $0x20] ss:$16 sps:$4 sm:$0xff]   ;;  %v2066_v24 = vld [vmem:[%s2977_s6 + $0xc] ss:$16 sps:$4 sm:$0xff]   ;;  %v1204_v52 = vpack.c.bf16 %v2822_v48, %v2822_v48 }
 0x189   : > { %1397 = vmatprep.subr.bf16.mxu0 %v2055_v58  ;;  %2054 = vset.pattern.permute.xlu0 %v2192_v13  ;;  %v2061_v23 = vld [vmem:[%s2977_s6 + $0x44] ss:$16 sps:$4 sm:$0xff]   ;;  %v2069_v25 = vld [vmem:[%s2977_s6 + $0x8] ss:$16 sps:$4 sm:$0xff]   ;;  %v2063_v26 = vld [vmem:[%s2977_s6 + $0x40] ss:$16 sps:$4 sm:$0xff]  }
 0x18a   : > { %1398 = vmatpush1.bf16.msra.mxu0 %v2057_v3  ;;  %1438 = vmatprep.subr.bf16.mxu1 %v2066_v24  ;;  %v2064_v27 = vld [vmem:[%s2977_s6 + $0x64] ss:$16 sps:$4 sm:$0xff]   ;;  %v2072_v28 = vld [vmem:[%s2977_s6 + $0x2c] ss:$16 sps:$4 sm:$0xff]   ;;  %v2075_v29 = vld [vmem:[%s2977_s6 + $0x28] ss:$16 sps:$4 sm:$0xff]  }
 0x18b   : > { %1399 = vmatprep.subr.bf16.mxu0 %v2058_v19  ;;  %1439 = vmatpush1.bf16.msra.mxu1 %v2069_v25  ;;  %v2068_v30 = vld [vmem:[%s2977_s6 + $0x60] ss:$16 sps:$4 sm:$0xff]   ;;  %v2070_v31 = vld [vmem:[%s2977_s6 + $0x84] ss:$16 sps:$4 sm:$0xff]   ;;  %v2078_v32 = vld [vmem:[%s2977_s6 + $0x4c] ss:$16 sps:$4 sm:$0xff]  }
 0x18c   : > { %1440 = vmatprep.subr.bf16.mxu1 %v2072_v28  ;;  %v2081_v33 = vld [vmem:[%s2977_s6 + $0x48] ss:$16 sps:$4 sm:$0xff]   ;;  %v2084_v34 = vld [vmem:[%s2977_s6 + $0x6c] ss:$16 sps:$4 sm:$0xff]   ;;  %v2074_v35 = vld [vmem:[%s2977_s6 + $0x80] ss:$16 sps:$4 sm:$0xff]  }
 0x18d   : > { %v2076_v36 = vld [vmem:[%s2977_s6 + $0xa4] ss:$16 sps:$4 sm:$0xff]   ;;  %v2087_v37 = vld [vmem:[%s2977_s6 + $0x68] ss:$16 sps:$4 sm:$0xff]   ;;  %v2090_v38 = vld [vmem:[%s2977_s6 + $0x8c] ss:$16 sps:$4 sm:$0xff]  }
 0x18e   : > { %1400 = vmatpush1.bf16.msra.mxu0 %v2060_v22  ;;  %v2080_v39 = vld [vmem:[%s2977_s6 + $0xa0] ss:$16 sps:$4 sm:$0xff]   ;;  %v2082_v40 = vld [vmem:[%s2977_s6 + $0xc4] ss:$16 sps:$4 sm:$0xff]   ;;  %v2093_v41 = vld [vmem:[%s2977_s6 + $0x88] ss:$16 sps:$4 sm:$0xff]  }
 0x18f   : > { %1401 = vmatprep.subr.bf16.mxu0 %v2061_v23  ;;  %1441 = vmatpush1.bf16.msra.mxu1 %v2075_v29  ;;  %v2094_v42 = vld [vmem:[%s2977_s6 + $0xac] ss:$16 sps:$4 sm:$0xff]   ;;  %v2086_v43 = vld [vmem:[%s2977_s6 + $0xc0] ss:$16 sps:$4 sm:$0xff]   ;;  %v2088_v44 = vld [vmem:[%s2977_s6 + $0xe4] ss:$16 sps:$4 sm:$0xff]  }
 0x190   : > { %1442 = vmatprep.subr.bf16.mxu1 %v2078_v32  ;;  %v2099_v45 = vld [vmem:[%s2977_s6 + $0xa8] ss:$16 sps:$4 sm:$0xff]   ;;  %v2100_v46 = vld [vmem:[%s2977_s6 + $0xcc] ss:$16 sps:$4 sm:$0xff]   ;;  %v2092_v47 = vld [vmem:[%s2977_s6 + $0xe0] ss:$16 sps:$4 sm:$0xff]  }
 0x191   : > { %v2098_v49 = vld [vmem:[%s2978_s7 + $0x4] ss:$16 sps:$4 sm:$0xff]   ;;  %v2105_v50 = vld [vmem:[%s2977_s6 + $0xc8] ss:$16 sps:$4 sm:$0xff]   ;;  %v2106_v51 = vld [vmem:[%s2977_s6 + $0xec] ss:$16 sps:$4 sm:$0xff]  }
 0x192   : > { %1402 = vmatpush1.bf16.msra.mxu0 %v2063_v26  ;;  %v2096_v53 = vld [vmem:[%s2978_s7] ss:$16 sps:$4 sm:$0xff]   ;;  %v2104_v54 = vld [vmem:[%s2978_s7 + $0x24] ss:$16 sps:$4 sm:$0xff]   ;;  %v2111_v55 = vld [vmem:[%s2977_s6 + $0xe8] ss:$16 sps:$4 sm:$0xff]  }
 0x193   : > { %1403 = vmatprep.subr.bf16.mxu0 %v2064_v27  ;;  %1443 = vmatpush1.bf16.msra.mxu1 %v2081_v33  ;;  %v2117_v56 = vld [vmem:[%s2978_s7 + $0xc] ss:$16 sps:$4 sm:$0xff]   ;;  %v2102_v57 = vld [vmem:[%s2978_s7 + $0x20] ss:$16 sps:$4 sm:$0xff]   ;;  %v2110_v20 = vld [vmem:[%s2978_s7 + $0x44] ss:$16 sps:$4 sm:$0xff]  }
 0x194   : > { %1444 = vmatprep.subr.bf16.mxu1 %v2084_v34  ;;  %v2115_v59 = vld [vmem:[%s2978_s7 + $0x8] ss:$16 sps:$4 sm:$0xff]   ;;  %v2123_v60 = vld [vmem:[%s2978_s7 + $0x2c] ss:$16 sps:$4 sm:$0xff]   ;;  %s2861_s27 = sshll.u32 %s2189_s2, 3  ;;  %s1514_s28 = ssub.s32 17, %s2189_s2 }
 0x195   : > { %v2108_v21 = vld [vmem:[%s2978_s7 + $0x40] ss:$16 sps:$4 sm:$0xff]   ;;  %v2114_v61 = vld [vmem:[%s2978_s7 + $0x64] ss:$16 sps:$4 sm:$0xff]   ;;  %v2121_v62 = vld [vmem:[%s2978_s7 + $0x28] ss:$16 sps:$4 sm:$0xff]   ;;  %s1194_s16 = scalar_lea.vmem %s2975_s1, %s2861_s27 }
 0x196   : > { %1404 = vmatpush1.bf16.msra.mxu0 %v2068_v30  ;;  %s2877_s17 = sshll.u32 %s1514_s28, 3  ;;  %v2129_v63 = vld [vmem:[%s2978_s7 + $0x4c] ss:$16 sps:$4 sm:$0xff]   ;;  %v2112_v0 = vld [vmem:[%s2978_s7 + $0x60] ss:$16 sps:$4 sm:$0xff]   ;;  %s1185_s4 = sshra.s32 %s2861_s27, 3 }
 0x197   : > { %1405 = vmatprep.subr.bf16.mxu0 %v2070_v31  ;;  %1445 = vmatpush1.bf16.msra.mxu1 %v2087_v37  ;;  %v1195_v1 = vld [vmem:[%s1194_s16] sm:$0xff]  ;;  %s1525_s22 = scalar_lea.vmem %s2975_s1, %s2877_s17  ;;  %v2127_v4 = vld [vmem:[%s2978_s7 + $0x48] ss:$16 sps:$4 sm:$0xff]   ;;  %v2135_v5 = vld [vmem:[%s2978_s7 + $0x6c] ss:$16 sps:$4 sm:$0xff]   ;;  %s2033_s20 = sshll.u32 %s1185_s4, 6 }
 0x198   : > { %1446 = vmatprep.subr.bf16.mxu1 %v2090_v38  ;;  %v2120_v2 = vld [vmem:[%s2978_s7 + $0x84] ss:$16 sps:$4 sm:$0xff]   ;;  %1198 = vperm.xlu0 %2054, %v1195_v1   ;;  %v2118_v6 = vld [vmem:[%s2978_s7 + $0x80] ss:$16 sps:$4 sm:$0xff]   ;;  %v2133_v9 = vld [vmem:[%s2978_s7 + $0x68] ss:$16 sps:$4 sm:$0xff]   ;;  %s1512_s28 = scalar_lea.vmem %s2979_s8, %s2861_s27  ;;  %s1843_s29 = scalar_lea.vmem %s2980_s9, %s2877_s17 }
 0x199   : > { %v1526_v15 = vld [vmem:[%s1525_s22] sm:$0xff]  ;;  %v2141_v10 = vld [vmem:[%s2978_s7 + $0x8c] ss:$16 sps:$4 sm:$0xff]   ;;  %v2139_v8 = vld [vmem:[%s2978_s7 + $0x88] ss:$16 sps:$4 sm:$0xff]   ;;  %s1189_s21 = scalar_lea.vmem [#allocation2], %s2033_s20 }
 0x19a   : > { %1406 = vmatpush1.bf16.msra.mxu0 %v2074_v35  ;;  %v2126_v7 = vld [vmem:[%s2978_s7 + $0xa4] ss:$16 sps:$4 sm:$0xff]   ;;  %v2124_v11 = vld [vmem:[%s2978_s7 + $0xa0] ss:$16 sps:$4 sm:$0xff]   ;;  %v2144_v14 = vld [vmem:[%s2978_s7 + $0xac] ss:$16 sps:$4 sm:$0xff]  }
 0x19b   : > { %1407 = vmatprep.subr.bf16.mxu0 %v2076_v36  ;;  %1447 = vmatpush1.bf16.msra.mxu1 %v2093_v41  ;;  %v2132_v12 = vld [vmem:[%s2978_s7 + $0xc4] ss:$16 sps:$4 sm:$0xff]   ;;  %v2130_v16 = vld [vmem:[%s2978_s7 + $0xc0] ss:$16 sps:$4 sm:$0xff]   ;;  %v2142_v18 = vld [vmem:[%s2978_s7 + $0xa8] ss:$16 sps:$4 sm:$0xff]  }
 0x19c   : > { %1448 = vmatprep.subr.bf16.mxu1 %v2094_v42  ;;  %1529 = vperm.xlu0 %2054, %v1526_v15   ;;  %v2138_v17 = vld [vmem:[%s2978_s7 + $0xe4] ss:$16 sps:$4 sm:$0xff]   ;;  %v2147_v58 = vld [vmem:[%s2978_s7 + $0xcc] ss:$16 sps:$4 sm:$0xff]   ;;  %v2136_v3 = vld [vmem:[%s2978_s7 + $0xe0] ss:$16 sps:$4 sm:$0xff]  }
 0x19d   : > { %v2145_v19 = vld [vmem:[%s2978_s7 + $0xc8] ss:$16 sps:$4 sm:$0xff]   ;;  %v2150_v22 = vld [vmem:[%s2978_s7 + $0xec] ss:$16 sps:$4 sm:$0xff]   ;;  %v1190_v25 = vld [vmem:[%s1189_s21] sm:$0xff]  ;;  %s1516_s22 = sshra.s32 %s2877_s17, 3 }
 0x19e   : > { %1408 = vmatpush1.bf16.msra.mxu0 %v2080_v39  ;;  %v2148_v24 = vld [vmem:[%s2978_s7 + $0xe8] ss:$16 sps:$4 sm:$0xff]   ;;  %v1192_v41 = vld [vmem:[%s1189_s21 + $0x10] sm:$0xff]  ;;  %s2034_s23 = sshll.u32 %s1516_s22, 6  ;;  %s1183_s2 = sadd.s32 1, %s2189_s2  }
 0x19f   : > { %1409 = vmatprep.subr.bf16.mxu0 %v2082_v40  ;;  %1449 = vmatpush1.bf16.msra.mxu1 %v2099_v45  ;;  %v1191_v26 = vld [vmem:[%s1189_s21 + $0x8] sm:$0xff]  ;;  %v1193_v35 = vld [vmem:[%s1189_s21 + $0x18] sm:$0xff]  ;;  %s1520_s24 = scalar_lea.vmem [#allocation2], %s2034_s23  ;;  %p1180_p0 = scmp.ge.s32.totalorder %s1183_s2, 18  }
 0x1a0   : > { %1450 = vmatprep.subr.bf16.mxu1 %v2100_v46  ;;  %v1524_v15 = vld [vmem:[%s1520_s24 + $0x38] sm:$0xff] }
 0x1a2   : > { %1410 = vmatpush1.bf16.msra.mxu0 %v2086_v43 }
 0x1a3   : > { %1411 = vmatprep.subr.bf16.mxu0 %v2088_v44  ;;  %1451 = vmatpush1.bf16.msra.mxu1 %v2105_v50 }
 0x1a4   : > { %1452 = vmatprep.subr.bf16.mxu1 %v2106_v51  ;;  %v1203_v51 = vld [vmem:[#allocation4] sm:$0xff] }
 0x1a6   : > { %1412 = vmatpush1.bf16.msra.mxu0 %v2092_v47 }
 0x1a7   : > { %1728 = vmatprep.subr.bf16.mxu0 %v2098_v49  ;;  %1453 = vmatpush1.bf16.msra.mxu1 %v2111_v55 }
 0x1a8   : > { %1769 = vmatprep.subr.bf16.mxu1 %v2117_v56 }
 0x1a9   : > { %1430 = vmatmul.mubr.bf16.vlgmr.msra.gmra.mrb[0].mxu0 %v1204_v52 }
 0x1aa   : > { %1729 = vmatpush1.bf16.msra.mxu0 %v2096_v53  ;;  %1760 = vmatprep.mubr.bf16.mxu0 %v2192_v13 }
 0x1ab   : > { %1730 = vmatprep.subr.bf16.mxu0 %v2104_v54  ;;  %1471 = vmatmul.mubr.bf16.vlgmr.msra.gmra.mrb[0].mxu1 %v1204_v52 }
 0x1ac   : > { %1770 = vmatpush1.bf16.msra.mxu1 %v2115_v59  ;;  %1801 = vmatprep.mubr.bf16.mxu1 %v2192_v13  ;;  %v2938_v13 = vld [vmem:[#allocation5] sm:$0xff]  ;;  %v1522_v59 = vld [vmem:[%s1520_s24 + $0x28] sm:$0xff] }
 0x1ad   : > { %1771 = vmatprep.subr.bf16.mxu1 %v2123_v60  ;;  %v1535_v23 = vpack.c.bf16 %v2938_v13, %v2938_v13 }
 0x1ae   : > { %1731 = vmatpush1.bf16.msra.mxu0 %v2102_v57  ;;  %v1521_v57 = vld [vmem:[%s1520_s24 + $0x20] sm:$0xff] }
 0x1af   : > { %1732 = vmatprep.subr.bf16.mxu0 %v2110_v20 }
 0x1b0   : > { %1772 = vmatpush1.bf16.msra.mxu1 %v2121_v62 }
 0x1b1   : > { %1773 = vmatprep.subr.bf16.mxu1 %v2129_v63 }
 0x1b2   : > { %1733 = vmatpush1.bf16.msra.mxu0 %v2108_v21 }
 0x1b3   : > { %1734 = vmatprep.subr.bf16.mxu0 %v2114_v61 }
 0x1b4   : > { %1774 = vmatpush1.bf16.msra.mxu1 %v2127_v4 }
 0x1b5   : > { %1775 = vmatprep.subr.bf16.mxu1 %v2135_v5 }
 0x1b6   : > { %1735 = vmatpush1.bf16.msra.mxu0 %v2112_v0 }
 0x1b7   : > { %1736 = vmatprep.subr.bf16.mxu0 %v2120_v2 }
 0x1b8   : > { %1776 = vmatpush1.bf16.msra.mxu1 %v2133_v9 }
 0x1b9   : > { %1777 = vmatprep.subr.bf16.mxu1 %v2141_v10 }
 0x1ba   : > { %1737 = vmatpush1.bf16.msra.mxu0 %v2118_v6 }
 0x1bb   : > { %1738 = vmatprep.subr.bf16.mxu0 %v2126_v7 }
 0x1bc   : > { %1778 = vmatpush1.bf16.msra.mxu1 %v2139_v8 }
 0x1bd   : > { %1779 = vmatprep.subr.bf16.mxu1 %v2144_v14 }
 0x1be   : > { %1739 = vmatpush1.bf16.msra.mxu0 %v2124_v11 }
 0x1bf   : > { %1740 = vmatprep.subr.bf16.mxu0 %v2132_v12  ;;  %v1523_v12 = vld [vmem:[%s1520_s24 + $0x30] sm:$0xff] }
 0x1c0   : > { %1780 = vmatpush1.bf16.msra.mxu1 %v2142_v18 }
 0x1c1   : > { %1781 = vmatprep.subr.bf16.mxu1 %v2147_v58 }
 0x1c2   : > { %1741 = vmatpush1.bf16.msra.mxu0 %v2130_v16 }
 0x1c3   : > { %1742 = vmatprep.subr.bf16.mxu0 %v2138_v17 }
 0x1c4   : > { %1782 = vmatpush1.bf16.msra.mxu1 %v2145_v19 }
 0x1c5   : > { %1783 = vmatprep.subr.bf16.mxu1 %v2150_v22 }
 0x1c6   : > { %1743 = vmatpush1.bf16.msra.mxu0 %v2136_v3 }
 0x1c8   : > { %1784 = vmatpush1.bf16.msra.mxu1 %v2148_v24 }
 0x1c9   : > { %1761 = vmatmul.mubr.bf16.vlgmr.msra.gmra.mrb[4].mxu0 %v1535_v23 }
 0x1cb   : > { %1802 = vmatmul.mubr.bf16.vlgmr.msra.gmra.mrb[4].mxu1 %v1535_v23 }
 0x217   : > { %v1199_v54 = vpop.permute.xlu0 %1198 }
 0x218   : > { %vm1201_vm0 = vcmp.gt.f32.partialorder %v1199_v54, 0.0 }
 0x27c   : > { %v1431_v27 = vpop.f32.mrb[0].mxu0 }
 0x27d   : > { %v1479_v28 = vadd.f32 %v1431_v27, %v1190_v25  ;;  %v1433_v29 = vpop.f32.mrb[1].mxu0  ;;  %v1534_v27 = vld [vmem:[#allocation6] sm:$0xff] }
 0x27e   : > { %v1480_v30 = vadd.f32 %v1433_v29, %v1191_v26  ;;  %v1435_v31 = vpop.f32.mrb[2].mxu0  ;;  %v1472_v36 = vpop.f32.mrb[0].mxu1 }
 0x27f   : > { %v1992_v32 = vmul.f32 -1.442695, %v1479_v28  ;;  %v1436_v33 = vpop.f32.mrb[3].mxu0  ;;  %v1474_v37 = vpop.f32.mrb[1].mxu1  ;;  %v1481_v43 = vadd.f32 %v1472_v36, %v1192_v41 }
 0x280   : > { %v1993_v34 = vmul.f32 -1.442695, %v1480_v30  ;;  %v1482_v38 = vadd.f32 %v1474_v37, %v1193_v35  ;;  %v1476_v39 = vpop.f32.mrb[2].mxu1  ;;  %v1530_v30 = vpop.permute.xlu0 %1529 }
 0x281   : > { %2151 = vpow2.f32 %v1992_v32  ;;  %v1477_v40 = vpop.f32.mrb[3].mxu1  ;;  %vm1532_vm1 = vcmp.gt.f32.partialorder %v1530_v30, 0.0 }
 0x282   : > { %2153 = vpow2.f32 %v1993_v34  ;;  %v1994_v42 = vmul.f32 -1.442695, %v1482_v38 }
 0x284   : > { %2155 = vpow2.f32 %v1994_v42 }
 0x285   : > { %2157 = vtanh.f32 %v1481_v43 }
 0x28b   : > { %v2152_v44 = vpop.eup %2151 }
 0x28c   : > { %v2154_v45 = vpop.eup %2153  ;;  %v1486_v46 = vadd.f32 1.0, %v2152_v44 }
 0x28d   : > { %v1492_v47 = vadd.f32 1.0, %v2154_v45 }
 0x28e   : > { %2159 = vrcp.f32 %v1486_v46  ;;  %v2156_v49 = vpop.eup %2155 }
 0x28f   : > { %2161 = vrcp.f32 %v1492_v47  ;;  %v2158_v50 = vpop.eup %2157  ;;  %v1499_v53 = vadd.f32 1.0, %v2156_v49 }
 0x291   : > { %2163 = vrcp.f32 %v1499_v53 }
 0x298   : > { %v2160_v52 = vpop.eup %2159 }
 0x299   : > { %v2162_v55 = vpop.eup %2161  ;;  %v1503_v56 = vmul.f32 %v2160_v52, %v2158_v50 }
 0x29a   : > { %v1502_v20 = vmul.f32 %v2162_v55, %v1203_v51 }
 0x29b   : > { %v2164_v8 = vpop.eup %2163 }
 0x29c   : > { %v1762_v60 = vpop.f32.mrb[4].mxu0  ;;  %v1504_v21 = vadd.f32 %v1503_v56, %v1502_v20 }
 0x29d   : > { %v1810_v61 = vadd.f32 %v1762_v60, %v1521_v57  ;;  %v1764_v62 = vpop.f32.mrb[5].mxu0 }
 0x29e   : > { %2165 = vtanh.f32 %v1504_v21  ;;  %v1509_v63 = vsel %vm1201_vm0, %v1504_v21, %v1203_v51  ;;  %v1811_v0 = vadd.f32 %v1764_v62, %v1522_v59  ;;  %v1766_v1 = vpop.f32.mrb[6].mxu0  ;;  %v1803_v6 = vpop.f32.mrb[4].mxu1 }
 0x29f   : > { %v2030_v2 = vmul.f32 -1.442695, %v1810_v61  ;;  %1510 = vst [vmem:[#allocation4] sm:$0xff] %v1509_v63  ;;  %v1767_v4 = vpop.f32.mrb[7].mxu0  ;;  %v1805_v7 = vpop.f32.mrb[5].mxu1  ;;  %v1812_v17 = vadd.f32 %v1803_v6, %v1523_v12 }
 0x2a0   : > { %v2031_v5 = vmul.f32 -1.442695, %v1811_v0  ;;  %v1813_v9 = vadd.f32 %v1805_v7, %v1524_v15  ;;  %v1807_v10 = vpop.f32.mrb[6].mxu1 }
 0x2a1   : > { %2167 = vpow2.f32 %v2030_v2  ;;  %v1808_v11 = vpop.f32.mrb[7].mxu1 }
 0x2a2   : > { %2169 = vpow2.f32 %v2031_v5  ;;  %v2032_v14 = vmul.f32 -1.442695, %v1813_v9 }
 0x2a4   : > { %2171 = vpow2.f32 %v2032_v14 }
 0x2a5   : > { %2173 = vtanh.f32 %v1812_v17 }
 0x2a8   : > { %v2166_v16 = vpop.eup %2165 }
 0x2a9   : > { %v1506_v18 = vmul.f32 %v2166_v16, %v2164_v8 }
 0x2ab   : > { %v2168_v58 = vpop.eup %2167  ;;  %v1507_v3 = vsel %vm1201_vm0, %v1506_v18, %v2822_v48  ;;  %v1511_v19 = vsel %vm1201_vm0, %v1506_v18, 0.0 }
 0x2ac   : > { %v2170_v22 = vpop.eup %2169  ;;  %v1817_v23 = vadd.f32 1.0, %v2168_v58  ;;  %1508 = vst [vmem:[#allocation3] sm:$0xff] %v1507_v3  ;;  %1513 = vst [vmem:[%s1512_s28] sm:$0xff] %v1511_v19 }
 0x2ad   : > { %v1823_v24 = vadd.f32 1.0, %v2170_v22 }
 0x2ae   : > { %2175 = vrcp.f32 %v1817_v23  ;;  %v2172_v25 = vpop.eup %2171 }
 0x2af   : > { %2177 = vrcp.f32 %v1823_v24  ;;  %v2174_v26 = vpop.eup %2173  ;;  %v1830_v29 = vadd.f32 1.0, %v2172_v25 }
 0x2b1   : > { %2179 = vrcp.f32 %v1830_v29 }
 0x2b3   :  { %v1845_v40 = vld [vmem:[#allocation3] sm:$0xff] (%p1180_p0) }
 0x2b4   :  { %1846 = vst [vmem:[%s2981_s10] sm:$0xff] (%p1180_p0), %v1845_v40 }
 0x2b8   : > { %v2176_v28 = vpop.eup %2175 }
 0x2b9   : > { %v2178_v31 = vpop.eup %2177  ;;  %v1834_v48 = vmul.f32 %v2176_v28, %v2174_v26 }
 0x2ba   : > { %v1833_v32 = vmul.f32 %v2178_v31, %v1534_v27 }
 0x2bb   : > { %v2180_v35 = vpop.eup %2179 }
 0x2bc   : > { %v1835_v33 = vadd.f32 %v1834_v48, %v1833_v32 }
 0x2be   : > { %2181 = vtanh.f32 %v1835_v33  ;;  %v1840_v34 = vsel %vm1532_vm1, %v1835_v33, %v1534_v27 }
 0x2bf   : > { %1841 = vst [vmem:[#allocation6] sm:$0xff] %v1840_v34 }
 0x2c6   :  { %1182 = sbr.rel (!%p1180_p0) target bundleno = 391 (0x187), region = 91 }
 0x2c8   : > { %v2182_v36 = vpop.eup %2181 }
 0x2c9   : > { %v1837_v37 = vmul.f32 %v2182_v36, %v2180_v35 }
 0x2cb   : > { %v1838_v38 = vsel %vm1532_vm1, %v1837_v37, %v2938_v13  ;;  %v1842_v39 = vsel %vm1532_vm1, %v1837_v37, 0.0 }
 0x2cc   : > { %1839 = vst [vmem:[#allocation5] sm:$0xff] %v1838_v38  ;;  %1844 = vst [vmem:[%s1843_s29] sm:$0xff] %v1842_v39 }
 0x2d3   :  { %v1847_v41 = vld [vmem:[#allocation5] sm:$0xff] }
 0x2d4   :  { %1848 = vst [vmem:[%s2982_s11] sm:$0xff] %v1847_v41 }

</bundles_post_ra>
